<compile_context>
chip_gen: v7x
topology: tpu7x:2x2x1
jax: 0.10.0
libtpu: 0.0.40
codegen_flags: <defaults>
</compile_context>

<pallas_src>
import functools

import jax
import jax.numpy as jnp
from jax.experimental import pallas as pl
from jax.experimental.pallas import tpu as pltpu

EPS = 1e-6  # T5LayerNorm epsilon


def _rmsnorm(x, w):
    # T5LayerNorm: RMS normalization, no mean subtraction, no bias (f32 math).
    var = jnp.mean(x * x, axis=-1, keepdims=True)
    return x * jax.lax.rsqrt(var + EPS) * w


def t5_layer_kernel(n_heads, d_head, apply_final_ln, *refs):
    if apply_final_ln:
        (x_ref, ln1_ref, wq_ref, wk_ref, wv_ref, wo_ref, ln2_ref,
         wi0_ref, wi1_ref, wof_ref, fln_ref,
         out_ref, xa_ref, h2_ref, acc_ref,
         q_ref, k_ref, v_ref, ctx_ref) = refs
    else:
        (x_ref, ln1_ref, wq_ref, wk_ref, wv_ref, wo_ref, ln2_ref,
         wi0_ref, wi1_ref, wof_ref,
         out_ref, xa_ref, h2_ref, acc_ref,
         q_ref, k_ref, v_ref, ctx_ref) = refs
        fln_ref = None

    bt, s, d = x_ref.shape          # batch-tile, seq, d_model (static)
    n = bt * s                      # flattened matmul M dimension
    f = pl.program_id(1)            # d_ff block index (innermost, "arbitrary")
    last_f = pl.num_programs(1) - 1

    # ---------------- attention sublayer: only on the first d_ff step ----------------
    @pl.when(f == 0)
    def _attention():
        x = x_ref[...].reshape(n, d)                                  # [N, D] f32
        h = _rmsnorm(x, ln1_ref[...]).astype(jnp.bfloat16)            # [N, D] bf16

        # Fused QKV projections: batch flattened into M, full-width MXU matmuls
        # (bf16 x bf16 -> f32 accumulation), results staged in VMEM scratch.
        q_ref[...] = jnp.dot(h, wq_ref[...],
                             preferred_element_type=jnp.float32).astype(jnp.bfloat16)
        k_ref[...] = jnp.dot(h, wk_ref[...],
                             preferred_element_type=jnp.float32).astype(jnp.bfloat16)
        v_ref[...] = jnp.dot(h, wv_ref[...],
                             preferred_element_type=jnp.float32).astype(jnp.bfloat16)

        # Per-head attention (static unrolled loop over heads).  Heads are
        # separated with static sub-window loads from the Q/K/V scratch refs
        # (no in-kernel transposes); the per-head context is written back into
        # ctx_ref so the output projection is one full-width matmul.
        for hd in range(n_heads):
            lo = hd * d_head
            qh = q_ref[:, lo:lo + d_head].reshape(bt, s, d_head)      # [bt, S, dh]
            kh = k_ref[:, lo:lo + d_head].reshape(bt, s, d_head)
            vh = v_ref[:, lo:lo + d_head].reshape(bt, s, d_head)

            # T5 attention: no 1/sqrt(dh) scaling; forward passes no mask.
            sc = jnp.einsum('bqe,bke->bqk', qh, kh,
                            preferred_element_type=jnp.float32)        # [bt, S, S]
            sc = sc - jnp.max(sc, axis=-1, keepdims=True)
            p = jnp.exp(sc)
            inv = pl.reciprocal(jnp.sum(p, axis=-1, keepdims=True), approx=True)
            p = (p * inv).astype(jnp.bfloat16)
            ctx = jnp.einsum('bqk,bke->bqe', p, vh,
                             preferred_element_type=jnp.float32)       # [bt, S, dh]
            ctx_ref[:, lo:lo + d_head] = ctx.reshape(n, d_head).astype(jnp.bfloat16)

        attn = jnp.dot(ctx_ref[...], wo_ref[...],
                       preferred_element_type=jnp.float32)              # [N, D]

        xa = x + attn                                                   # residual
        xa_ref[...] = xa
        h2_ref[...] = _rmsnorm(xa, ln2_ref[...]).astype(jnp.bfloat16)
        acc_ref[...] = jnp.zeros_like(acc_ref)

    # ---------------- FFN sublayer: gated GELU, tiled over d_ff ----------------
    h2 = h2_ref[...]                                                    # [N, D] bf16
    g = jax.nn.gelu(jnp.dot(h2, wi0_ref[...], preferred_element_type=jnp.float32),
                    approximate=True)
    u = jnp.dot(h2, wi1_ref[...], preferred_element_type=jnp.float32)
    acc_ref[...] += jnp.dot((g * u).astype(jnp.bfloat16), wof_ref[...],
                            preferred_element_type=jnp.float32)

    # ---------------- finalize: residual (+ fused final RMSNorm on last layer) -------
    @pl.when(f == last_f)
    def _finalize():
        y = xa_ref[...] + acc_ref[...]
        if apply_final_ln:
            y = _rmsnorm(y, fln_ref[...])
        out_ref[...] = y.reshape(bt, s, d).astype(out_ref.dtype)


def _final_rmsnorm_kernel(x_ref, w_ref, out_ref):
    # Only used if the encoder has zero blocks (degenerate case).
    out_ref[0] = _rmsnorm(x_ref[0], w_ref[...])


def _pick_block_b(batch, seq):
    # Smallest divisor of batch with block_b * seq >= 256 (or all of batch).
    target = max(1, -(-256 // max(seq, 1)))
    best = 1
    for cand in range(1, batch + 1):
        if batch % cand == 0:
            best = cand
            if cand >= target:
                break
    return best


def _pick_block_ff(d_ff):
    for cand in (512, 256, 128):
        if d_ff % cand == 0:
            return cand
    return d_ff


def t5_encoder_layer(x, p, n_heads, d_head, final_ln=None, *,
                     block_b=None, block_ff=None):
    B, S, D = x.shape
    d_inner = n_heads * d_head
    d_ff = p['wi0'].shape[1]

    if block_b is None:
        block_b = _pick_block_b(B, S)
    if block_ff is None:
        block_ff = _pick_block_ff(d_ff)
    assert B % block_b == 0, "batch must be divisible by block_b"
    assert d_ff % block_ff == 0, "d_ff must be divisible by block_ff"
    n_b = B // block_b
    n_ff = d_ff // block_ff

    apply_final = final_ln is not None
    kernel = functools.partial(t5_layer_kernel, n_heads, d_head, apply_final)

    in_specs = [
        pl.BlockSpec((block_b, S, D), lambda b, f: (b, 0, 0)),     # x
        pl.BlockSpec((1, D), lambda b, f: (0, 0)),                 # ln1
        pl.BlockSpec((D, d_inner), lambda b, f: (0, 0)),           # wq (bf16)
        pl.BlockSpec((D, d_inner), lambda b, f: (0, 0)),           # wk
        pl.BlockSpec((D, d_inner), lambda b, f: (0, 0)),           # wv
        pl.BlockSpec((d_inner, D), lambda b, f: (0, 0)),           # wo
        pl.BlockSpec((1, D), lambda b, f: (0, 0)),                 # ln2
        pl.BlockSpec((D, block_ff), lambda b, f: (0, f)),          # wi0 block
        pl.BlockSpec((D, block_ff), lambda b, f: (0, f)),          # wi1 block
        pl.BlockSpec((block_ff, D), lambda b, f: (f, 0)),          # wo_ff block
    ]
    args = [x, p['ln1'], p['wq'], p['wk'], p['wv'], p['wo'],
            p['ln2'], p['wi0'], p['wi1'], p['wof']]
    if apply_final:
        in_specs.append(pl.BlockSpec((1, D), lambda b, f: (0, 0)))  # final_layer_norm
        args.append(final_ln)

    return pl.pallas_call(
        kernel,
        out_shape=jax.ShapeDtypeStruct((B, S, D), x.dtype),
        grid=(n_b, n_ff),
        in_specs=in_specs,
        out_specs=pl.BlockSpec((block_b, S, D), lambda b, f: (b, 0, 0)),
        scratch_shapes=[
            pltpu.VMEM((block_b * S, D), jnp.float32),         # post-attention residual
            pltpu.VMEM((block_b * S, D), jnp.bfloat16),        # RMSNorm'd FFN input
            pltpu.VMEM((block_b * S, D), jnp.float32),         # FFN accumulator
            pltpu.VMEM((block_b * S, d_inner), jnp.bfloat16),  # Q
            pltpu.VMEM((block_b * S, d_inner), jnp.bfloat16),  # K
            pltpu.VMEM((block_b * S, d_inner), jnp.bfloat16),  # V
            pltpu.VMEM((block_b * S, d_inner), jnp.bfloat16),  # context reassembly
        ],
        compiler_params=pltpu.CompilerParams(
            dimension_semantics=("parallel", "arbitrary"),
            vmem_limit_bytes=48 * 1024 * 1024),
    )(*args)


def final_rmsnorm(x, w):
    B, S, D = x.shape
    return pl.pallas_call(
        _final_rmsnorm_kernel,
        out_shape=jax.ShapeDtypeStruct((B, S, D), x.dtype),
        grid=(B,),
        in_specs=[pl.BlockSpec((1, S, D), lambda b: (b, 0, 0)),
                  pl.BlockSpec((1, D), lambda b: (0, 0))],
        out_specs=pl.BlockSpec((1, S, D), lambda b: (b, 0, 0)),
        compiler_params=pltpu.CompilerParams(dimension_semantics=("parallel",)),
    )(x, w)


def moment_encoder_forward(x, params, *, block_b=None, block_ff=None):
    """Mirrors Model.forward: blocks -> final_layer_norm -> dropout -> (x, None)."""
    layers = params['layers']
    if not layers:
        return final_rmsnorm(x, params['final_ln']), None
    for i, layer_p in enumerate(layers):
        fln = params['final_ln'] if i == len(layers) - 1 else None  # fused into last block
        x = t5_encoder_layer(x, layer_p, params['n_heads'], params['d_head'],
                             final_ln=fln, block_b=block_b, block_ff=block_ff)
    # encoder.dropout: identity (inference / deterministic).
    return x, None


def init_params(key, n_layers, d_model, n_heads, d_head, d_ff):
    d_inner = n_heads * d_head
    scale = 0.02
    layers = []
    for _ in range(n_layers):
        key, k0, k1, k2, k3, k4, k5, k6 = jax.random.split(key, 8)
        layers.append({
            'ln1': jnp.ones((1, d_model), jnp.float32),
            'wq': (scale * jax.random.normal(k0, (d_model, d_inner))).astype(jnp.bfloat16),
            'wk': (scale * jax.random.normal(k1, (d_model, d_inner))).astype(jnp.bfloat16),
            'wv': (scale * jax.random.normal(k2, (d_model, d_inner))).astype(jnp.bfloat16),
            'wo': (scale * jax.random.normal(k3, (d_inner, d_model))).astype(jnp.bfloat16),
            'ln2': jnp.ones((1, d_model), jnp.float32),
            'wi0': (scale * jax.random.normal(k4, (d_model, d_ff))).astype(jnp.bfloat16),
            'wi1': (scale * jax.random.normal(k5, (d_model, d_ff))).astype(jnp.bfloat16),
            'wof': (scale * jax.random.normal(k6, (d_ff, d_model))).astype(jnp.bfloat16),
        })
    return {
        'layers': layers,
        'final_ln': jnp.ones((1, d_model), jnp.float32),
        'n_heads': n_heads,
        'd_head': d_head,
    }


if __name__ == "__main__":
    B, S, D = 2, 8, 64
    N_HEADS, D_HEAD, D_FF, N_LAYERS = 4, 16, 256, 2

    key = jax.random.PRNGKey(0)
    kx, kp = jax.random.split(key)
    x = jax.random.normal(kx, (B, S, D), dtype=jnp.float32)
    params = init_params(kp, N_LAYERS, D, N_HEADS, D_HEAD, D_FF)

    # block_ff=128 -> 2 d_ff accumulation steps; auto block_b=2 flattens batch into M.
    out, aux = moment_encoder_forward(x, params, block_ff=128)
    out = jax.block_until_ready(out)

    assert out.shape == (B, S, D)
    assert aux is None
    assert bool(jnp.all(jnp.isfinite(out)))
    print("KERNEL_OK")
</pallas_src>

<mosaic_0001>
module attributes {stable_mosaic.version = 11 : i64} {
  func.func @t5_layer_kernel(%arg0: i32, %arg1: i32, %arg2: memref<2x8x64xf32, #tpu.memory_space<vmem>>, %arg3: memref<1x64xf32, #tpu.memory_space<vmem>>, %arg4: memref<64x64xbf16, #tpu.memory_space<vmem>>, %arg5: memref<64x64xbf16, #tpu.memory_space<vmem>>, %arg6: memref<64x64xbf16, #tpu.memory_space<vmem>>, %arg7: memref<64x64xbf16, #tpu.memory_space<vmem>>, %arg8: memref<1x64xf32, #tpu.memory_space<vmem>>, %arg9: memref<64x128xbf16, #tpu.memory_space<vmem>>, %arg10: memref<64x128xbf16, #tpu.memory_space<vmem>>, %arg11: memref<128x64xbf16, #tpu.memory_space<vmem>>, %arg12: memref<2x8x64xf32, #tpu.memory_space<vmem>>, %arg13: memref<16x64xf32, #tpu.memory_space<vmem>>, %arg14: memref<16x64xbf16, #tpu.memory_space<vmem>>, %arg15: memref<16x64xf32, #tpu.memory_space<vmem>>, %arg16: memref<16x64xbf16, #tpu.memory_space<vmem>>, %arg17: memref<16x64xbf16, #tpu.memory_space<vmem>>, %arg18: memref<16x64xbf16, #tpu.memory_space<vmem>>, %arg19: memref<16x64xbf16, #tpu.memory_space<vmem>>) attributes {dimension_semantics = [#tpu.dimension_semantics<parallel>, #tpu.dimension_semantics<arbitrary>], iteration_bounds = array<i64: 1, 2>, scalar_prefetch = 0 : i64, scratch_operands = 7 : i64, tpu.core_type = #tpu.core_type<tc>, window_params = [{transform_indices = @transform_0, window_bounds = array<i64: 2, 8, 64>}, {pipeline_mode = #tpu.pipeline_mode<synchronous>, transform_indices = @transform_1, window_bounds = array<i64: 1, 64>}, {pipeline_mode = #tpu.pipeline_mode<synchronous>, transform_indices = @transform_2, window_bounds = array<i64: 64, 64>}, {pipeline_mode = #tpu.pipeline_mode<synchronous>, transform_indices = @transform_3, window_bounds = array<i64: 64, 64>}, {pipeline_mode = #tpu.pipeline_mode<synchronous>, transform_indices = @transform_4, window_bounds = array<i64: 64, 64>}, {pipeline_mode = #tpu.pipeline_mode<synchronous>, transform_indices = @transform_5, window_bounds = array<i64: 64, 64>}, {pipeline_mode = #tpu.pipeline_mode<synchronous>, transform_indices = @transform_6, window_bounds = array<i64: 1, 64>}, {transform_indices = @transform_7, window_bounds = array<i64: 64, 128>}, {transform_indices = @transform_8, window_bounds = array<i64: 64, 128>}, {transform_indices = @transform_9, window_bounds = array<i64: 128, 64>}, {transform_indices = @transform_10, window_bounds = array<i64: 2, 8, 64>}]} {
    %c0_i32 = arith.constant 0 : i32
    %0 = arith.cmpi eq, %arg1, %c0_i32 : i32
    %1 = arith.extui %0 : i1 to i32
    %c0_i32_0 = arith.constant 0 : i32
    %2 = arith.cmpi ne, %1, %c0_i32_0 : i32
    scf.if %2 {
      %c0_19 = arith.constant 0 : index
      %c0_20 = arith.constant 0 : index
      %c0_21 = arith.constant 0 : index
      %31 = vector.load %arg2[%c0_19, %c0_20, %c0_21] : memref<2x8x64xf32, #tpu.memory_space<vmem>>, vector<2x8x64xf32>
      %32 = vector.shape_cast %31 : vector<2x8x64xf32> to vector<16x64xf32>
      %c0_22 = arith.constant 0 : index
      %c0_23 = arith.constant 0 : index
      %33 = vector.load %arg3[%c0_22, %c0_23] : memref<1x64xf32, #tpu.memory_space<vmem>>, vector<1x64xf32>
      %34 = arith.mulf %32, %32 : vector<16x64xf32>
      %cst_24 = arith.constant dense<0.000000e+00> : vector<16xf32>
      %35 = vector.multi_reduction <add>, %34, %cst_24 [1] : vector<16x64xf32> to vector<16xf32>
      %36 = vector.shape_cast %35 : vector<16xf32> to vector<16x1xf32>
      %cst_25 = arith.constant 6.400000e+01 : f32
      %37 = vector.broadcast %cst_25 : f32 to vector<16x1xf32>
      %38 = arith.divf %36, %37 : vector<16x1xf32>
      %cst_26 = arith.constant 9.99999997E-7 : f32
      %39 = vector.broadcast %cst_26 : f32 to vector<16x1xf32>
      %40 = arith.addf %38, %39 : vector<16x1xf32>
      %41 = math.rsqrt %40 : vector<16x1xf32>
      %42 = vector.broadcast %41 : vector<16x1xf32> to vector<16x64xf32>
      %43 = arith.mulf %32, %42 : vector<16x64xf32>
      %44 = vector.broadcast %33 : vector<1x64xf32> to vector<16x64xf32>
      %45 = arith.mulf %43, %44 : vector<16x64xf32>
      %46 = arith.truncf %45 : vector<16x64xf32> to vector<16x64xbf16>
      %c0_27 = arith.constant 0 : index
      %c0_28 = arith.constant 0 : index
      %47 = vector.load %arg4[%c0_27, %c0_28] : memref<64x64xbf16, #tpu.memory_space<vmem>>, vector<64x64xbf16>
      %cst_29 = arith.constant dense<0.000000e+00> : vector<16x64xf32>
      %48 = tpu.matmul %46, %47, %cst_29 {dimension_numbers = #tpu.dot_dimension_numbers<[1], [0], [0], [1], [0, 0, 1, 1], [], []>} : vector<16x64xbf16>, vector<64x64xbf16>, vector<16x64xf32> -> vector<16x64xf32>
      %49 = arith.truncf %48 : vector<16x64xf32> to vector<16x64xbf16>
      %c0_30 = arith.constant 0 : index
      %c0_31 = arith.constant 0 : index
      %50 = vector.load %arg16[%c0_30, %c0_31] : memref<16x64xbf16, #tpu.memory_space<vmem>>, vector<16x64xbf16>
      tpu.vector_store %arg16[%c0_30, %c0_31], %49 {strides = array<i32>} : memref<16x64xbf16, #tpu.memory_space<vmem>>, vector<16x64xbf16>,
      %c0_32 = arith.constant 0 : index
      %c0_33 = arith.constant 0 : index
      %51 = vector.load %arg5[%c0_32, %c0_33] : memref<64x64xbf16, #tpu.memory_space<vmem>>, vector<64x64xbf16>
      %cst_34 = arith.constant dense<0.000000e+00> : vector<16x64xf32>
      %52 = tpu.matmul %46, %51, %cst_34 {dimension_numbers = #tpu.dot_dimension_numbers<[1], [0], [0], [1], [0, 0, 1, 1], [], []>} : vector<16x64xbf16>, vector<64x64xbf16>, vector<16x64xf32> -> vector<16x64xf32>
      %53 = arith.truncf %52 : vector<16x64xf32> to vector<16x64xbf16>
      %c0_35 = arith.constant 0 : index
      %c0_36 = arith.constant 0 : index
      %54 = vector.load %arg17[%c0_35, %c0_36] : memref<16x64xbf16, #tpu.memory_space<vmem>>, vector<16x64xbf16>
      tpu.vector_store %arg17[%c0_35, %c0_36], %53 {strides = array<i32>} : memref<16x64xbf16, #tpu.memory_space<vmem>>, vector<16x64xbf16>,
      %c0_37 = arith.constant 0 : index
      %c0_38 = arith.constant 0 : index
      %55 = vector.load %arg6[%c0_37, %c0_38] : memref<64x64xbf16, #tpu.memory_space<vmem>>, vector<64x64xbf16>
      %cst_39 = arith.constant dense<0.000000e+00> : vector<16x64xf32>
      %56 = tpu.matmul %46, %55, %cst_39 {dimension_numbers = #tpu.dot_dimension_numbers<[1], [0], [0], [1], [0, 0, 1, 1], [], []>} : vector<16x64xbf16>, vector<64x64xbf16>, vector<16x64xf32> -> vector<16x64xf32>
      %57 = arith.truncf %56 : vector<16x64xf32> to vector<16x64xbf16>
      %c0_40 = arith.constant 0 : index
      %c0_41 = arith.constant 0 : index
      %58 = vector.load %arg18[%c0_40, %c0_41] : memref<16x64xbf16, #tpu.memory_space<vmem>>, vector<16x64xbf16>
      tpu.vector_store %arg18[%c0_40, %c0_41], %57 {strides = array<i32>} : memref<16x64xbf16, #tpu.memory_space<vmem>>, vector<16x64xbf16>,
      %c0_42 = arith.constant 0 : index
      %c0_43 = arith.constant 0 : index
      %59 = vector.load %arg16[%c0_42, %c0_43] : memref<16x64xbf16, #tpu.memory_space<vmem>>, vector<16x16xbf16>
      %60 = vector.shape_cast %59 : vector<16x16xbf16> to vector<2x8x16xbf16>
      %c0_44 = arith.constant 0 : index
      %c0_45 = arith.constant 0 : index
      %61 = vector.load %arg17[%c0_44, %c0_45] : memref<16x64xbf16, #tpu.memory_space<vmem>>, vector<16x16xbf16>
      %62 = vector.shape_cast %61 : vector<16x16xbf16> to vector<2x8x16xbf16>
      %c0_46 = arith.constant 0 : index
      %c0_47 = arith.constant 0 : index
      %63 = vector.load %arg18[%c0_46, %c0_47] : memref<16x64xbf16, #tpu.memory_space<vmem>>, vector<16x16xbf16>
      %64 = vector.shape_cast %63 : vector<16x16xbf16> to vector<2x8x16xbf16>
      "tpu.trace_start"() <{level = 10 : i32, message = "bqe,bke->bqk"}> : () -> ()
      %cst_48 = arith.constant dense<0.000000e+00> : vector<2x8x8xf32>
      %65 = tpu.matmul %60, %62, %cst_48 {dimension_numbers = #tpu.dot_dimension_numbers<[2], [2], [1], [1], [0, 0, 0, 1, 1, 1], [0], [0]>} : vector<2x8x16xbf16>, vector<2x8x16xbf16>, vector<2x8x8xf32> -> vector<2x8x8xf32>
      "tpu.trace_stop"() : () -> ()
      %cst_49 = arith.constant dense<0xFF800000> : vector<2x8xf32>
      %66 = vector.multi_reduction <maximumf>, %65, %cst_49 [2] : vector<2x8x8xf32> to vector<2x8xf32>
      %67 = vector.shape_cast %66 : vector<2x8xf32> to vector<2x8x1xf32>
      %68 = vector.broadcast %67 : vector<2x8x1xf32> to vector<2x8x8xf32>
      %69 = arith.subf %65, %68 : vector<2x8x8xf32>
      %70 = math.exp %69 : vector<2x8x8xf32>
      %cst_50 = arith.constant dense<0.000000e+00> : vector<2x8xf32>
      %71 = vector.multi_reduction <add>, %70, %cst_50 [2] : vector<2x8x8xf32> to vector<2x8xf32>
      %72 = vector.shape_cast %71 : vector<2x8xf32> to vector<2x8x1xf32>
      %73 = tpu.reciprocal %72 {approx = true} : vector<2x8x1xf32> -> vector<2x8x1xf32>
      %74 = vector.broadcast %73 : vector<2x8x1xf32> to vector<2x8x8xf32>
      %75 = arith.mulf %70, %74 : vector<2x8x8xf32>
      %76 = arith.truncf %75 : vector<2x8x8xf32> to vector<2x8x8xbf16>
      "tpu.trace_start"() <{level = 10 : i32, message = "bqk,bke->bqe"}> : () -> ()
      %cst_51 = arith.constant dense<0.000000e+00> : vector<2x8x16xf32>
      %77 = tpu.matmul %76, %64, %cst_51 {dimension_numbers = #tpu.dot_dimension_numbers<[2], [1], [1], [2], [0, 0, 0, 1, 1, 2], [0], [0]>} : vector<2x8x8xbf16>, vector<2x8x16xbf16>, vector<2x8x16xf32> -> vector<2x8x16xf32>
      "tpu.trace_stop"() : () -> ()
      %78 = vector.shape_cast %77 : vector<2x8x16xf32> to vector<16x16xf32>
      %79 = arith.truncf %78 : vector<16x16xf32> to vector<16x16xbf16>
      %c0_52 = arith.constant 0 : index
      %c0_53 = arith.constant 0 : index
      %80 = vector.load %arg19[%c0_52, %c0_53] : memref<16x64xbf16, #tpu.memory_space<vmem>>, vector<16x16xbf16>
      tpu.vector_store %arg19[%c0_52, %c0_53], %79 {strides = array<i32>} : memref<16x64xbf16, #tpu.memory_space<vmem>>, vector<16x16xbf16>,
      %c0_54 = arith.constant 0 : index
      %c16 = arith.constant 16 : index
      %81 = vector.load %arg16[%c0_54, %c16] : memref<16x64xbf16, #tpu.memory_space<vmem>>, vector<16x16xbf16>
      %82 = vector.shape_cast %81 : vector<16x16xbf16> to vector<2x8x16xbf16>
      %c0_55 = arith.constant 0 : index
      %c16_56 = arith.constant 16 : index
      %83 = vector.load %arg17[%c0_55, %c16_56] : memref<16x64xbf16, #tpu.memory_space<vmem>>, vector<16x16xbf16>
      %84 = vector.shape_cast %83 : vector<16x16xbf16> to vector<2x8x16xbf16>
      %c0_57 = arith.constant 0 : index
      %c16_58 = arith.constant 16 : index
      %85 = vector.load %arg18[%c0_57, %c16_58] : memref<16x64xbf16, #tpu.memory_space<vmem>>, vector<16x16xbf16>
      %86 = vector.shape_cast %85 : vector<16x16xbf16> to vector<2x8x16xbf16>
      "tpu.trace_start"() <{level = 10 : i32, message = "bqe,bke->bqk"}> : () -> ()
      %cst_59 = arith.constant dense<0.000000e+00> : vector<2x8x8xf32>
      %87 = tpu.matmul %82, %84, %cst_59 {dimension_numbers = #tpu.dot_dimension_numbers<[2], [2], [1], [1], [0, 0, 0, 1, 1, 1], [0], [0]>} : vector<2x8x16xbf16>, vector<2x8x16xbf16>, vector<2x8x8xf32> -> vector<2x8x8xf32>
      "tpu.trace_stop"() : () -> ()
      %cst_60 = arith.constant dense<0xFF800000> : vector<2x8xf32>
      %88 = vector.multi_reduction <maximumf>, %87, %cst_60 [2] : vector<2x8x8xf32> to vector<2x8xf32>
      %89 = vector.shape_cast %88 : vector<2x8xf32> to vector<2x8x1xf32>
      %90 = vector.broadcast %89 : vector<2x8x1xf32> to vector<2x8x8xf32>
      %91 = arith.subf %87, %90 : vector<2x8x8xf32>
      %92 = math.exp %91 : vector<2x8x8xf32>
      %cst_61 = arith.constant dense<0.000000e+00> : vector<2x8xf32>
      %93 = vector.multi_reduction <add>, %92, %cst_61 [2] : vector<2x8x8xf32> to vector<2x8xf32>
      %94 = vector.shape_cast %93 : vector<2x8xf32> to vector<2x8x1xf32>
      %95 = tpu.reciprocal %94 {approx = true} : vector<2x8x1xf32> -> vector<2x8x1xf32>
      %96 = vector.broadcast %95 : vector<2x8x1xf32> to vector<2x8x8xf32>
      %97 = arith.mulf %92, %96 : vector<2x8x8xf32>
      %98 = arith.truncf %97 : vector<2x8x8xf32> to vector<2x8x8xbf16>
      "tpu.trace_start"() <{level = 10 : i32, message = "bqk,bke->bqe"}> : () -> ()
      %cst_62 = arith.constant dense<0.000000e+00> : vector<2x8x16xf32>
      %99 = tpu.matmul %98, %86, %cst_62 {dimension_numbers = #tpu.dot_dimension_numbers<[2], [1], [1], [2], [0, 0, 0, 1, 1, 2], [0], [0]>} : vector<2x8x8xbf16>, vector<2x8x16xbf16>, vector<2x8x16xf32> -> vector<2x8x16xf32>
      "tpu.trace_stop"() : () -> ()
      %100 = vector.shape_cast %99 : vector<2x8x16xf32> to vector<16x16xf32>
      %101 = arith.truncf %100 : vector<16x16xf32> to vector<16x16xbf16>
      %c0_63 = arith.constant 0 : index
      %c16_64 = arith.constant 16 : index
      %102 = vector.load %arg19[%c0_63, %c16_64] : memref<16x64xbf16, #tpu.memory_space<vmem>>, vector<16x16xbf16>
      tpu.vector_store %arg19[%c0_63, %c16_64], %101 {strides = array<i32>} : memref<16x64xbf16, #tpu.memory_space<vmem>>, vector<16x16xbf16>,
      %c0_65 = arith.constant 0 : index
      %c32 = arith.constant 32 : index
      %103 = vector.load %arg16[%c0_65, %c32] : memref<16x64xbf16, #tpu.memory_space<vmem>>, vector<16x16xbf16>
      %104 = vector.shape_cast %103 : vector<16x16xbf16> to vector<2x8x16xbf16>
      %c0_66 = arith.constant 0 : index
      %c32_67 = arith.constant 32 : index
      %105 = vector.load %arg17[%c0_66, %c32_67] : memref<16x64xbf16, #tpu.memory_space<vmem>>, vector<16x16xbf16>
      %106 = vector.shape_cast %105 : vector<16x16xbf16> to vector<2x8x16xbf16>
      %c0_68 = arith.constant 0 : index
      %c32_69 = arith.constant 32 : index
      %107 = vector.load %arg18[%c0_68, %c32_69] : memref<16x64xbf16, #tpu.memory_space<vmem>>, vector<16x16xbf16>
      %108 = vector.shape_cast %107 : vector<16x16xbf16> to vector<2x8x16xbf16>
      "tpu.trace_start"() <{level = 10 : i32, message = "bqe,bke->bqk"}> : () -> ()
      %cst_70 = arith.constant dense<0.000000e+00> : vector<2x8x8xf32>
      %109 = tpu.matmul %104, %106, %cst_70 {dimension_numbers = #tpu.dot_dimension_numbers<[2], [2], [1], [1], [0, 0, 0, 1, 1, 1], [0], [0]>} : vector<2x8x16xbf16>, vector<2x8x16xbf16>, vector<2x8x8xf32> -> vector<2x8x8xf32>
      "tpu.trace_stop"() : () -> ()
      %cst_71 = arith.constant dense<0xFF800000> : vector<2x8xf32>
      %110 = vector.multi_reduction <maximumf>, %109, %cst_71 [2] : vector<2x8x8xf32> to vector<2x8xf32>
      %111 = vector.shape_cast %110 : vector<2x8xf32> to vector<2x8x1xf32>
      %112 = vector.broadcast %111 : vector<2x8x1xf32> to vector<2x8x8xf32>
      %113 = arith.subf %109, %112 : vector<2x8x8xf32>
      %114 = math.exp %113 : vector<2x8x8xf32>
      %cst_72 = arith.constant dense<0.000000e+00> : vector<2x8xf32>
      %115 = vector.multi_reduction <add>, %114, %cst_72 [2] : vector<2x8x8xf32> to vector<2x8xf32>
      %116 = vector.shape_cast %115 : vector<2x8xf32> to vector<2x8x1xf32>
      %117 = tpu.reciprocal %116 {approx = true} : vector<2x8x1xf32> -> vector<2x8x1xf32>
      %118 = vector.broadcast %117 : vector<2x8x1xf32> to vector<2x8x8xf32>
      %119 = arith.mulf %114, %118 : vector<2x8x8xf32>
      %120 = arith.truncf %119 : vector<2x8x8xf32> to vector<2x8x8xbf16>
      "tpu.trace_start"() <{level = 10 : i32, message = "bqk,bke->bqe"}> : () -> ()
      %cst_73 = arith.constant dense<0.000000e+00> : vector<2x8x16xf32>
      %121 = tpu.matmul %120, %108, %cst_73 {dimension_numbers = #tpu.dot_dimension_numbers<[2], [1], [1], [2], [0, 0, 0, 1, 1, 2], [0], [0]>} : vector<2x8x8xbf16>, vector<2x8x16xbf16>, vector<2x8x16xf32> -> vector<2x8x16xf32>
      "tpu.trace_stop"() : () -> ()
      %122 = vector.shape_cast %121 : vector<2x8x16xf32> to vector<16x16xf32>
      %123 = arith.truncf %122 : vector<16x16xf32> to vector<16x16xbf16>
      %c0_74 = arith.constant 0 : index
      %c32_75 = arith.constant 32 : index
      %124 = vector.load %arg19[%c0_74, %c32_75] : memref<16x64xbf16, #tpu.memory_space<vmem>>, vector<16x16xbf16>
      tpu.vector_store %arg19[%c0_74, %c32_75], %123 {strides = array<i32>} : memref<16x64xbf16, #tpu.memory_space<vmem>>, vector<16x16xbf16>,
      %c0_76 = arith.constant 0 : index
      %c48 = arith.constant 48 : index
      %125 = vector.load %arg16[%c0_76, %c48] : memref<16x64xbf16, #tpu.memory_space<vmem>>, vector<16x16xbf16>
      %126 = vector.shape_cast %125 : vector<16x16xbf16> to vector<2x8x16xbf16>
      %c0_77 = arith.constant 0 : index
      %c48_78 = arith.constant 48 : index
      %127 = vector.load %arg17[%c0_77, %c48_78] : memref<16x64xbf16, #tpu.memory_space<vmem>>, vector<16x16xbf16>
      %128 = vector.shape_cast %127 : vector<16x16xbf16> to vector<2x8x16xbf16>
      %c0_79 = arith.constant 0 : index
      %c48_80 = arith.constant 48 : index
      %129 = vector.load %arg18[%c0_79, %c48_80] : memref<16x64xbf16, #tpu.memory_space<vmem>>, vector<16x16xbf16>
      %130 = vector.shape_cast %129 : vector<16x16xbf16> to vector<2x8x16xbf16>
      "tpu.trace_start"() <{level = 10 : i32, message = "bqe,bke->bqk"}> : () -> ()
      %cst_81 = arith.constant dense<0.000000e+00> : vector<2x8x8xf32>
      %131 = tpu.matmul %126, %128, %cst_81 {dimension_numbers = #tpu.dot_dimension_numbers<[2], [2], [1], [1], [0, 0, 0, 1, 1, 1], [0], [0]>} : vector<2x8x16xbf16>, vector<2x8x16xbf16>, vector<2x8x8xf32> -> vector<2x8x8xf32>
      "tpu.trace_stop"() : () -> ()
      %cst_82 = arith.constant dense<0xFF800000> : vector<2x8xf32>
      %132 = vector.multi_reduction <maximumf>, %131, %cst_82 [2] : vector<2x8x8xf32> to vector<2x8xf32>
      %133 = vector.shape_cast %132 : vector<2x8xf32> to vector<2x8x1xf32>
      %134 = vector.broadcast %133 : vector<2x8x1xf32> to vector<2x8x8xf32>
      %135 = arith.subf %131, %134 : vector<2x8x8xf32>
      %136 = math.exp %135 : vector<2x8x8xf32>
      %cst_83 = arith.constant dense<0.000000e+00> : vector<2x8xf32>
      %137 = vector.multi_reduction <add>, %136, %cst_83 [2] : vector<2x8x8xf32> to vector<2x8xf32>
      %138 = vector.shape_cast %137 : vector<2x8xf32> to vector<2x8x1xf32>
      %139 = tpu.reciprocal %138 {approx = true} : vector<2x8x1xf32> -> vector<2x8x1xf32>
      %140 = vector.broadcast %139 : vector<2x8x1xf32> to vector<2x8x8xf32>
      %141 = arith.mulf %136, %140 : vector<2x8x8xf32>
      %142 = arith.truncf %141 : vector<2x8x8xf32> to vector<2x8x8xbf16>
      "tpu.trace_start"() <{level = 10 : i32, message = "bqk,bke->bqe"}> : () -> ()
      %cst_84 = arith.constant dense<0.000000e+00> : vector<2x8x16xf32>
      %143 = tpu.matmul %142, %130, %cst_84 {dimension_numbers = #tpu.dot_dimension_numbers<[2], [1], [1], [2], [0, 0, 0, 1, 1, 2], [0], [0]>} : vector<2x8x8xbf16>, vector<2x8x16xbf16>, vector<2x8x16xf32> -> vector<2x8x16xf32>
      "tpu.trace_stop"() : () -> ()
      %144 = vector.shape_cast %143 : vector<2x8x16xf32> to vector<16x16xf32>
      %145 = arith.truncf %144 : vector<16x16xf32> to vector<16x16xbf16>
      %c0_85 = arith.constant 0 : index
      %c48_86 = arith.constant 48 : index
      %146 = vector.load %arg19[%c0_85, %c48_86] : memref<16x64xbf16, #tpu.memory_space<vmem>>, vector<16x16xbf16>
      tpu.vector_store %arg19[%c0_85, %c48_86], %145 {strides = array<i32>} : memref<16x64xbf16, #tpu.memory_space<vmem>>, vector<16x16xbf16>,
      %c0_87 = arith.constant 0 : index
      %c0_88 = arith.constant 0 : index
      %147 = vector.load %arg19[%c0_87, %c0_88] : memref<16x64xbf16, #tpu.memory_space<vmem>>, vector<16x64xbf16>
      %c0_89 = arith.constant 0 : index
      %c0_90 = arith.constant 0 : index
      %148 = vector.load %arg7[%c0_89, %c0_90] : memref<64x64xbf16, #tpu.memory_space<vmem>>, vector<64x64xbf16>
      %cst_91 = arith.constant dense<0.000000e+00> : vector<16x64xf32>
      %149 = tpu.matmul %147, %148, %cst_91 {dimension_numbers = #tpu.dot_dimension_numbers<[1], [0], [0], [1], [0, 0, 1, 1], [], []>} : vector<16x64xbf16>, vector<64x64xbf16>, vector<16x64xf32> -> vector<16x64xf32>
      %150 = arith.addf %32, %149 : vector<16x64xf32>
      %c0_92 = arith.constant 0 : index
      %c0_93 = arith.constant 0 : index
      %151 = vector.load %arg13[%c0_92, %c0_93] : memref<16x64xf32, #tpu.memory_space<vmem>>, vector<16x64xf32>
      tpu.vector_store %arg13[%c0_92, %c0_93], %150 {strides = array<i32>} : memref<16x64xf32, #tpu.memory_space<vmem>>, vector<16x64xf32>,
      %c0_94 = arith.constant 0 : index
      %c0_95 = arith.constant 0 : index
      %152 = vector.load %arg8[%c0_94, %c0_95] : memref<1x64xf32, #tpu.memory_space<vmem>>, vector<1x64xf32>
      %153 = arith.mulf %150, %150 : vector<16x64xf32>
      %cst_96 = arith.constant dense<0.000000e+00> : vector<16xf32>
      %154 = vector.multi_reduction <add>, %153, %cst_96 [1] : vector<16x64xf32> to vector<16xf32>
      %155 = vector.shape_cast %154 : vector<16xf32> to vector<16x1xf32>
      %cst_97 = arith.constant 6.400000e+01 : f32
      %156 = vector.broadcast %cst_97 : f32 to vector<16x1xf32>
      %157 = arith.divf %155, %156 : vector<16x1xf32>
      %cst_98 = arith.constant 9.99999997E-7 : f32
      %158 = vector.broadcast %cst_98 : f32 to vector<16x1xf32>
      %159 = arith.addf %157, %158 : vector<16x1xf32>
      %160 = math.rsqrt %159 : vector<16x1xf32>
      %161 = vector.broadcast %160 : vector<16x1xf32> to vector<16x64xf32>
      %162 = arith.mulf %150, %161 : vector<16x64xf32>
      %163 = vector.broadcast %152 : vector<1x64xf32> to vector<16x64xf32>
      %164 = arith.mulf %162, %163 : vector<16x64xf32>
      %165 = arith.truncf %164 : vector<16x64xf32> to vector<16x64xbf16>
      %c0_99 = arith.constant 0 : index
      %c0_100 = arith.constant 0 : index
      %166 = vector.load %arg14[%c0_99, %c0_100] : memref<16x64xbf16, #tpu.memory_space<vmem>>, vector<16x64xbf16>
      tpu.vector_store %arg14[%c0_99, %c0_100], %165 {strides = array<i32>} : memref<16x64xbf16, #tpu.memory_space<vmem>>, vector<16x64xbf16>,
      %cst_101 = arith.constant 0.000000e+00 : f32
      %167 = vector.broadcast %cst_101 : f32 to vector<16x64xf32>
      %c0_102 = arith.constant 0 : index
      %c0_103 = arith.constant 0 : index
      %168 = vector.load %arg15[%c0_102, %c0_103] : memref<16x64xf32, #tpu.memory_space<vmem>>, vector<16x64xf32>
      tpu.vector_store %arg15[%c0_102, %c0_103], %167 {strides = array<i32>} : memref<16x64xf32, #tpu.memory_space<vmem>>, vector<16x64xf32>,
    } else {
    }
    %c0 = arith.constant 0 : index
    %c0_1 = arith.constant 0 : index
    %3 = vector.load %arg14[%c0, %c0_1] : memref<16x64xbf16, #tpu.memory_space<vmem>>, vector<16x64xbf16>
    %c0_2 = arith.constant 0 : index
    %c0_3 = arith.constant 0 : index
    %4 = vector.load %arg9[%c0_2, %c0_3] : memref<64x128xbf16, #tpu.memory_space<vmem>>, vector<64x128xbf16>
    %cst = arith.constant dense<0.000000e+00> : vector<16x128xf32>
    %5 = tpu.matmul %3, %4, %cst {dimension_numbers = #tpu.dot_dimension_numbers<[1], [0], [0], [1], [0, 0, 1, 1], [], []>} : vector<16x64xbf16>, vector<64x128xbf16>, vector<16x128xf32> -> vector<16x128xf32>
    %6 = arith.mulf %5, %5 : vector<16x128xf32>
    %7 = arith.mulf %5, %6 : vector<16x128xf32>
    %cst_4 = arith.constant 4.471500e-02 : f32
    %8 = vector.broadcast %cst_4 : f32 to vector<16x128xf32>
    %9 = arith.mulf %8, %7 : vector<16x128xf32>
    %10 = arith.addf %5, %9 : vector<16x128xf32>
    %cst_5 = arith.constant 0.797884583 : f32
    %11 = vector.broadcast %cst_5 : f32 to vector<16x128xf32>
    %12 = arith.mulf %11, %10 : vector<16x128xf32>
    %13 = math.tanh %12 : vector<16x128xf32>
    %cst_6 = arith.constant 1.000000e+00 : f32
    %14 = vector.broadcast %cst_6 : f32 to vector<16x128xf32>
    %15 = arith.addf %14, %13 : vector<16x128xf32>
    %cst_7 = arith.constant 5.000000e-01 : f32
    %16 = vector.broadcast %cst_7 : f32 to vector<16x128xf32>
    %17 = arith.mulf %16, %15 : vector<16x128xf32>
    %18 = arith.mulf %5, %17 : vector<16x128xf32>
    %c0_8 = arith.constant 0 : index
    %c0_9 = arith.constant 0 : index
    %19 = vector.load %arg10[%c0_8, %c0_9] : memref<64x128xbf16, #tpu.memory_space<vmem>>, vector<64x128xbf16>
    %cst_10 = arith.constant dense<0.000000e+00> : vector<16x128xf32>
    %20 = tpu.matmul %3, %19, %cst_10 {dimension_numbers = #tpu.dot_dimension_numbers<[1], [0], [0], [1], [0, 0, 1, 1], [], []>} : vector<16x64xbf16>, vector<64x128xbf16>, vector<16x128xf32> -> vector<16x128xf32>
    %c0_11 = arith.constant 0 : index
    %c0_12 = arith.constant 0 : index
    %21 = vector.load %arg15[%c0_11, %c0_12] : memref<16x64xf32, #tpu.memory_space<vmem>>, vector<16x64xf32>
    %22 = arith.mulf %18, %20 : vector<16x128xf32>
    %23 = arith.truncf %22 : vector<16x128xf32> to vector<16x128xbf16>
    %c0_13 = arith.constant 0 : index
    %c0_14 = arith.constant 0 : index
    %24 = vector.load %arg11[%c0_13, %c0_14] : memref<128x64xbf16, #tpu.memory_space<vmem>>, vector<128x64xbf16>
    %cst_15 = arith.constant dense<0.000000e+00> : vector<16x64xf32>
    %25 = tpu.matmul %23, %24, %cst_15 {dimension_numbers = #tpu.dot_dimension_numbers<[1], [0], [0], [1], [0, 0, 1, 1], [], []>} : vector<16x128xbf16>, vector<128x64xbf16>, vector<16x64xf32> -> vector<16x64xf32>
    %26 = arith.addf %21, %25 : vector<16x64xf32>
    %c0_16 = arith.constant 0 : index
    %c0_17 = arith.constant 0 : index
    %27 = vector.load %arg15[%c0_16, %c0_17] : memref<16x64xf32, #tpu.memory_space<vmem>>, vector<16x64xf32>
    tpu.vector_store %arg15[%c0_16, %c0_17], %26 {strides = array<i32>} : memref<16x64xf32, #tpu.memory_space<vmem>>, vector<16x64xf32>,
    %c1_i32 = arith.constant 1 : i32
    %28 = arith.cmpi eq, %arg1, %c1_i32 : i32
    %29 = arith.extui %28 : i1 to i32
    %c0_i32_18 = arith.constant 0 : i32
    %30 = arith.cmpi ne, %29, %c0_i32_18 : i32
    scf.if %30 {
      %c0_19 = arith.constant 0 : index
      %c0_20 = arith.constant 0 : index
      %31 = vector.load %arg13[%c0_19, %c0_20] : memref<16x64xf32, #tpu.memory_space<vmem>>, vector<16x64xf32>
      %c0_21 = arith.constant 0 : index
      %c0_22 = arith.constant 0 : index
      %32 = vector.load %arg15[%c0_21, %c0_22] : memref<16x64xf32, #tpu.memory_space<vmem>>, vector<16x64xf32>
      %33 = arith.addf %31, %32 : vector<16x64xf32>
      %34 = vector.shape_cast %33 : vector<16x64xf32> to vector<2x8x64xf32>
      %c0_23 = arith.constant 0 : index
      %c0_24 = arith.constant 0 : index
      %c0_25 = arith.constant 0 : index
      %35 = vector.load %arg12[%c0_23, %c0_24, %c0_25] : memref<2x8x64xf32, #tpu.memory_space<vmem>>, vector<2x8x64xf32>
      tpu.vector_store %arg12[%c0_23, %c0_24, %c0_25], %34 {strides = array<i32>} : memref<2x8x64xf32, #tpu.memory_space<vmem>>, vector<2x8x64xf32>,
    } else {
    }
    return
  }
  func.func @transform_0(%arg0: i32, %arg1: i32) -> (i32, i32, i32) {
    %c0_i32 = arith.constant 0 : i32
    %c0_i32_0 = arith.constant 0 : i32
    %c0_i32_1 = arith.constant 0 : i32
    return %arg0, %c0_i32, %c0_i32_0 : i32, i32, i32
  }
  func.func @transform_1(%arg0: i32, %arg1: i32) -> (i32, i32) {
    %c0_i32 = arith.constant 0 : i32
    %c0_i32_0 = arith.constant 0 : i32
    %c0_i32_1 = arith.constant 0 : i32
    return %c0_i32, %c0_i32_0 : i32, i32
  }
  func.func @transform_2(%arg0: i32, %arg1: i32) -> (i32, i32) {
    %c0_i32 = arith.constant 0 : i32
    %c0_i32_0 = arith.constant 0 : i32
    %c0_i32_1 = arith.constant 0 : i32
    return %c0_i32, %c0_i32_0 : i32, i32
  }
  func.func @transform_3(%arg0: i32, %arg1: i32) -> (i32, i32) {
    %c0_i32 = arith.constant 0 : i32
    %c0_i32_0 = arith.constant 0 : i32
    %c0_i32_1 = arith.constant 0 : i32
    return %c0_i32, %c0_i32_0 : i32, i32
  }
  func.func @transform_4(%arg0: i32, %arg1: i32) -> (i32, i32) {
    %c0_i32 = arith.constant 0 : i32
    %c0_i32_0 = arith.constant 0 : i32
    %c0_i32_1 = arith.constant 0 : i32
    return %c0_i32, %c0_i32_0 : i32, i32
  }
  func.func @transform_5(%arg0: i32, %arg1: i32) -> (i32, i32) {
    %c0_i32 = arith.constant 0 : i32
    %c0_i32_0 = arith.constant 0 : i32
    %c0_i32_1 = arith.constant 0 : i32
    return %c0_i32, %c0_i32_0 : i32, i32
  }
  func.func @transform_6(%arg0: i32, %arg1: i32) -> (i32, i32) {
    %c0_i32 = arith.constant 0 : i32
    %c0_i32_0 = arith.constant 0 : i32
    %c0_i32_1 = arith.constant 0 : i32
    return %c0_i32, %c0_i32_0 : i32, i32
  }
  func.func @transform_7(%arg0: i32, %arg1: i32) -> (i32, i32) {
    %c0_i32 = arith.constant 0 : i32
    %c0_i32_0 = arith.constant 0 : i32
    return %c0_i32, %arg1 : i32, i32
  }
  func.func @transform_8(%arg0: i32, %arg1: i32) -> (i32, i32) {
    %c0_i32 = arith.constant 0 : i32
    %c0_i32_0 = arith.constant 0 : i32
    return %c0_i32, %arg1 : i32, i32
  }
  func.func @transform_9(%arg0: i32, %arg1: i32) -> (i32, i32) {
    %c0_i32 = arith.constant 0 : i32
    %c0_i32_0 = arith.constant 0 : i32
    return %arg1, %c0_i32 : i32, i32
  }
  func.func @transform_10(%arg0: i32, %arg1: i32) -> (i32, i32, i32) {
    %c0_i32 = arith.constant 0 : i32
    %c0_i32_0 = arith.constant 0 : i32
    %c0_i32_1 = arith.constant 0 : i32
    return %arg0, %c0_i32, %c0_i32_0 : i32, i32, i32
  }
}

</mosaic_0001>

<bundles_post_ra>
// kernel: tpu_custom_call.1
= control target key start
LH: loop header
LB: loop body
LE: loop exit
PB: predicated region body
PF: predicated region fallthrough
CT: control target
= control target key end

     0   :  { %s3615_s0 = inlined_call_operand.hbm [shape: f32[2,8,64], index: 0, kind: input, shape index: {}]   ;;  %s3616_s1 = inlined_call_operand.vmem [shape: f32[1,64], index: 1, kind: input, shape index: {}]   ;;  %s3617_s2 = inlined_call_operand.vmem [shape: bf16[64,64], index: 2, kind: input, shape index: {}]   ;;  %s3618_s3 = inlined_call_operand.vmem [shape: bf16[64,64], index: 3, kind: input, shape index: {}]   ;;  %s3619_s4 = inlined_call_operand.hbm [shape: bf16[64,64], index: 4, kind: input, shape index: {}]   ;;  %s3620_s5 = inlined_call_operand.hbm [shape: bf16[64,64], index: 5, kind: input, shape index: {}]   ;;  %s3621_s6 = inlined_call_operand.vmem [shape: f32[1,64], index: 6, kind: input, shape index: {}]   ;;  %s3622_s7 = inlined_call_operand.vmem [shape: bf16[64,256], index: 7, kind: input, shape index: {}]   ;;  %s3623_s8 = inlined_call_operand.vmem [shape: bf16[64,256], index: 8, kind: input, shape index: {}]   ;;  %s3624_s9 = inlined_call_operand.vmem [shape: bf16[256,64], index: 9, kind: input, shape index: {}]   ;;  %s3625_s10 = inlined_call_operand.hbm [shape: f32[2,8,64], index: 10, kind: output, shape index: {}]  }
   0x1   :  { %3635 = sst [smem:[#allocation23_spill]] %s3616_s1 }
   0x2   :  { %3636 = sst [smem:[#allocation24_spill]] %s3618_s3 }
   0x3   :  { %3637 = sst [smem:[#allocation25_spill]] %s3621_s6 }
   0x4   :  { %3638 = sst [smem:[#allocation26_spill]] %s3625_s10 }
   0x5   :  { %15 = vsyncpa [#allocation10], 0 }
   0x6   :  { %16 = vsyncpa [#allocation13], 0 }
   0x7   :  { %17 = vsyncpa [#allocation11], 0  ;;  %s3137_s13 = smov 0   ;;  %s3139_s14 = smov 0  }
   0x8   :  { %s3141_s15 = smov 0   ;;  %s3143_s16 = smov 0  }
   0x9   :  { %s3145_s17 = smov 0  }
   0xa LB: > { %s3626_s18 = sadd.s32 4294967295, %s3060_s17   ;;  %s32_s19 = sadd.s32 1, %s3056_s16  ;;  %s3060_s17 = sphi %s3145_s17, %s23_s17   ;;  %s3056_s16 = sphi %s3143_s16, %s3663_s16   ;;  %s3052_s15 = sphi %s3141_s15, %s3662_s15   ;;  %s3048_s14 = sphi %s3139_s14, %s3661_s14   ;;  %s3044_s13 = sphi %s3137_s13, %s3660_s13  }
   0xb   : > { %p33_p0 = scmp.ge.s32.totalorder %s32_s19, 2  ;;  %s194_s20 = sadd.s32 1, %s3048_s14 }
   0xc   : > { %p201_p1 = scmp.ne.s32.totalorder %s3048_s14, %s3044_s13  ;;  %p202_p2 = scmp.eq.s32.totalorder %s3060_s17, 0 }
   0xd   : > { %s3665_s19 = smov (%p33_p0, %s32_s19), 0  ;;  %p2363_p4 = scmp.ge.s32.totalorder %s3060_s17, 1 }
   0xe   : > { %3639 = sst [smem:[#allocation21_spill]] %s3665_s19  ;;  %p3170_p3 = por %p202_p2, %p201_p1 }
   0xf   : > { %s191_s22 = ssub.s32 %s3056_s16, %s3665_s19  ;;  %p296_p5 = scmp.lt.s32.totalorder %s3060_s17, 3 }
  0x10   : > { %s3640_s21 = scalar_select %p3170_p3, 1, 0 }
  0x11   : > { %p192_p6 = scmp.eq.s32.totalorder %s191_s22, 0  ;;  %p3178_p7 = pnand %p2363_p4, %p296_p5 }
  0x12   : > { %p3184_p8 = scmp.eq.s32.totalorder %s3626_s18, 0  ;;  %s3062_s26 = smov [#allocation12]  }
  0x13   : > { %s3641_s23 = scalar_select %p3178_p7, 1, 0 }
  0x14   : > { %s3642_s24 = scalar_select %p3184_p8, 1, 0 }
  0x15   : > { %s3189_s25 = scalar_select %p192_p6, %s3048_s14, %s194_s20  }
  0x16   : > { %p2741_p9 = pneg %p3178_p7  ;;  %s333_s27 = sshll.u32 %s3062_s26, 4  ;;  %s334_s27 = int_to_ptr.vmem [resolvable:$true] %s333_s27 }
  0x17   : > { %3643 = sst [smem:[#allocation22_spill]] %s3189_s25  ;;  %s2900_s11 = scalar_lea.hbm %s3619_s4, 512 }
  0x18   : > { %p3195_p10 = pnand %p3184_p8, %p2741_p9  ;;  %p2901_p11 = scmp.ne.s32.totalorder %s3619_s4, %s2900_s11 }
  0x19   : > { %p2907_p1 = scmp.lt.u32.totalorder %s2900_s11, %s3619_s4 }
  0x1a   : > { %p3207_p12 = pneg %p3195_p10 }
  0x1c   : > { %p2903_p13 = pnand %p3207_p12, %p2901_p11 }
  0x1e   : > { %p2904_p0 = pneg %p2903_p13 }
  0x20   : > { %p2909_p2 = pnand %p2907_p1, %p2904_p0 }
  0x22   : > { %2912 = shalt.err (!%p2909_p2)
}
  0x23   : > { %s2913_s29 = scalar_lea.vmem %s334_s27, 512  ;;  %p2921_p9 = scmp.lt.s32.totalorder %s334_s27, %s334_s27 }
  0x24   : > { %p2914_p4 = scmp.ne.s32.totalorder %s334_s27, %s2913_s29  ;;  %p2922_p8 = scmp.lt.s32.totalorder %s2913_s29, %s2913_s29 }
  0x26   : > { %p2916_p5 = pnand %p2914_p4, %p3207_p12  ;;  %p2923_p7 = por %p2922_p8, %p2921_p9 }
  0x28   : > { %p2917_p6 = pneg %p2916_p5 }
  0x2a   : > { %p2924_p3 = pnand %p2923_p7, %p2917_p6 }
  0x2c   : > { %2927 = shalt.err (!%p2924_p3)
}
  0x2d   : > { %s3633_s30 = smov 64   ;;  %s3634_s12 = smov 4  }
  0x2e   : > { %2747 = dma.hbm_to_vmem [thread:$0]  (!%p3195_p10), %s3619_s4, 512, %s334_s27, [#allocation13], %s3633_s30, %s3633_s30, %s3634_s12  }
  0x2f   : > { %s3065_s22 = smov [#allocation9]   ;;  %s2928_s25 = scalar_lea.hbm %s3615_s0, 256 }
  0x30   : > { %s311_s26 = sshll.u32 %s3065_s22, 4  ;;  %p2929_p3 = scmp.ne.s32.totalorder %s3615_s0, %s2928_s25  ;;  %s312_s26 = int_to_ptr.vmem [resolvable:$true] %s311_s26 }
  0x31   : > { %p2935_p11 = scmp.lt.u32.totalorder %s2928_s25, %s3615_s0 }
  0x32   : > { %p2931_p7 = pnand %p2929_p3, %p3207_p12 }
  0x34   : > { %p2932_p8 = pneg %p2931_p7 }
  0x36   : > { %p2937_p13 = pnand %p2935_p11, %p2932_p8 }
  0x38   : > { %2940 = shalt.err (!%p2937_p13)
}
  0x39   : > { %s2941_s27 = scalar_lea.vmem %s312_s26, 256  ;;  %p2949_p4 = scmp.lt.s32.totalorder %s312_s26, %s312_s26 }
  0x3a   : > { %p2942_p0 = scmp.ne.s32.totalorder %s312_s26, %s2941_s27  ;;  %p2950_p5 = scmp.lt.s32.totalorder %s2941_s27, %s2941_s27 }
  0x3c   : > { %p2944_p1 = pnand %p2942_p0, %p3207_p12  ;;  %p2951_p6 = por %p2950_p5, %p2949_p4 }
  0x3e   : > { %p2945_p2 = pneg %p2944_p1 }
  0x40   : > { %p2952_p9 = pnand %p2951_p6, %p2945_p2 }
  0x42   : > { %2955 = shalt.err (!%p2952_p9)
}
  0x43   : > { %s3066_s6 = smov 128   ;;  %s3067_s10 = smov 8  }
  0x44   : > { %2744 = dma.hbm_to_vmem [thread:$0]  (!%p3195_p10), %s3615_s0, 256, %s312_s26, [#allocation10], %s3066_s6, %s3066_s6, %s3067_s10  }
  0x45   : > { %s3068_s19 = smov [#allocation14]   ;;  %s2956_s22 = scalar_lea.hbm %s3620_s5, 512 }
  0x46   : > { %s346_s25 = sshll.u32 %s3068_s19, 4  ;;  %p2957_p3 = scmp.ne.s32.totalorder %s3620_s5, %s2956_s22  ;;  %s347_s25 = int_to_ptr.vmem [resolvable:$true] %s346_s25 }
  0x47   : > { %p2963_p11 = scmp.lt.u32.totalorder %s2956_s22, %s3620_s5 }
  0x48   : > { %p2959_p7 = pnand %p2957_p3, %p3207_p12 }
  0x4a   : > { %p2960_p8 = pneg %p2959_p7 }
  0x4c   : > { %p2965_p13 = pnand %p2963_p11, %p2960_p8 }
  0x4e   : > { %2968 = shalt.err (!%p2965_p13)
}
  0x4f   : > { %s2969_s26 = scalar_lea.vmem %s347_s25, 512  ;;  %p2977_p4 = scmp.lt.s32.totalorder %s347_s25, %s347_s25 }
  0x50   : > { %p2970_p0 = scmp.ne.s32.totalorder %s347_s25, %s2969_s26  ;;  %p2978_p5 = scmp.lt.s32.totalorder %s2969_s26, %s2969_s26 }
  0x52   : > { %p2972_p1 = pnand %p2970_p0, %p3207_p12  ;;  %p2979_p6 = por %p2978_p5, %p2977_p4 }
  0x54   : > { %p2973_p2 = pneg %p2972_p1 }
  0x56   : > { %p2980_p9 = pnand %p2979_p6, %p2973_p2 }
  0x58   : > { %2983 = shalt.err (!%p2980_p9)
}
  0x59   : > { %s3646_s6 = smov 4   ;;  %s3647_s10 = smov 64  }
  0x5a   : > { %2750 = dma.hbm_to_vmem [thread:$0]  (!%p3195_p10), %s3620_s5, 512, %s347_s25, [#allocation13], %s3647_s10, %s3647_s10, %s3646_s6  }
  0x5b   : > { %p2367_p3 = scmp.ge.s32.totalorder %s3060_s17, 2 }
  0x5c   : > { %p3648_p12 = scmp.ne.s32.totalorder (!%p2367_p3), %s3640_s21, 0 }
  0x5d   : > { %359 = sbr.rel (%p2367_p3) target bundleno = 119 (0x77), region = 44 }
  0x64   : > { %362 = sbr.rel (!%p3648_p12) target bundleno = 109 (0x6d), region = 48  ;;  %s364_s20 = sand.u32 (%p3648_p12), 1, %s3048_s14  }
  0x65   : > { %s2369_s1 = sshll.u32 (%p3648_p12), %s3056_s16, 2  ;;  %s2368_s3 = sshll.u32 (%p3648_p12), %s364_s20, 5 }
  0x66   : > { %s368_s18 = scalar_lea.vmem (%p3648_p12), %s3622_s7, %s2369_s1  ;;  %s366_s11 = scalar_lea.vmem (%p3648_p12), [#allocation15], %s2368_s3 }
  0x67   : > { %v384_v0 = vld [vmem:[%s368_s18] sm:$0xf] (%p3648_p12)  ;;  %v386_v1 = vld [vmem:[%s368_s18 + $0x8] sm:$0xf] (%p3648_p12)  ;;  %v388_v2 = vld [vmem:[%s368_s18 + $0x10] sm:$0xf] (%p3648_p12) }
  0x68   : > { %385 = vst [vmem:[%s366_s11] sm:$0xf] (%p3648_p12), %v384_v0  ;;  %387 = vst [vmem:[%s366_s11 + $0x4] sm:$0xf] (%p3648_p12), %v386_v1  ;;  %v390_v3 = vld [vmem:[%s368_s18 + $0x18] sm:$0xf] (%p3648_p12) }
  0x69   : > { %v392_v4 = vld [vmem:[%s368_s18 + $0x20] sm:$0xf] (%p3648_p12)  ;;  %389 = vst [vmem:[%s366_s11 + $0x8] sm:$0xf] (%p3648_p12), %v388_v2  ;;  %391 = vst [vmem:[%s366_s11 + $0xc] sm:$0xf] (%p3648_p12), %v390_v3 }
  0x6a   : > { %393 = vst [vmem:[%s366_s11 + $0x10] sm:$0xf] (%p3648_p12), %v392_v4  ;;  %v394_v5 = vld [vmem:[%s368_s18 + $0x28] sm:$0xf] (%p3648_p12)  ;;  %v396_v6 = vld [vmem:[%s368_s18 + $0x30] sm:$0xf] (%p3648_p12) }
  0x6b   : > { %v398_v7 = vld [vmem:[%s368_s18 + $0x38] sm:$0xf]  ;;  %395 = vst [vmem:[%s366_s11 + $0x14] sm:$0xf] %v394_v5  ;;  %397 = vst [vmem:[%s366_s11 + $0x18] sm:$0xf] %v396_v6 }
  0x6c   : > { %399 = vst [vmem:[%s366_s11 + $0x1c] sm:$0xf] %v398_v7 }
  0x6d PF: > { %p3649_p10 = scmp.ne.s32.totalorder %s3640_s21, 0 }
  0x6e   : > { %s440_s25 = sand.u32 (%p3649_p10), 1, %s3048_s14   ;;  %s2371_s22 = sshll.u32 (%p3649_p10), %s3056_s16, 2 }
  0x6f   : > { %438 = sbr.rel (!%p3649_p10) target bundleno = 119 (0x77), region = 89  ;;  %s2370_s29 = sshll.u32 (%p3649_p10), %s440_s25, 5 }
  0x70   : > { %s444_s6 = scalar_lea.vmem (%p3649_p10), %s3623_s8, %s2371_s22  ;;  %s442_s10 = scalar_lea.vmem (%p3649_p10), [#allocation16], %s2370_s29 }
  0x71   : > { %v460_v8 = vld [vmem:[%s444_s6] sm:$0xf] (%p3649_p10)  ;;  %v462_v9 = vld [vmem:[%s444_s6 + $0x8] sm:$0xf] (%p3649_p10)  ;;  %v464_v10 = vld [vmem:[%s444_s6 + $0x10] sm:$0xf] (%p3649_p10) }
  0x72   : > { %461 = vst [vmem:[%s442_s10] sm:$0xf] (%p3649_p10), %v460_v8  ;;  %463 = vst [vmem:[%s442_s10 + $0x4] sm:$0xf] (%p3649_p10), %v462_v9  ;;  %v466_v11 = vld [vmem:[%s444_s6 + $0x18] sm:$0xf] (%p3649_p10) }
  0x73   : > { %v468_v12 = vld [vmem:[%s444_s6 + $0x20] sm:$0xf] (%p3649_p10)  ;;  %465 = vst [vmem:[%s442_s10 + $0x8] sm:$0xf] (%p3649_p10), %v464_v10  ;;  %467 = vst [vmem:[%s442_s10 + $0xc] sm:$0xf] (%p3649_p10), %v466_v11 }
  0x74   : > { %469 = vst [vmem:[%s442_s10 + $0x10] sm:$0xf] (%p3649_p10), %v468_v12  ;;  %v470_v13 = vld [vmem:[%s444_s6 + $0x28] sm:$0xf] (%p3649_p10)  ;;  %v472_v14 = vld [vmem:[%s444_s6 + $0x30] sm:$0xf] (%p3649_p10) }
  0x75   : > { %v474_v15 = vld [vmem:[%s444_s6 + $0x38] sm:$0xf] (%p3649_p10)  ;;  %471 = vst [vmem:[%s442_s10 + $0x14] sm:$0xf] (%p3649_p10), %v470_v13  ;;  %473 = vst [vmem:[%s442_s10 + $0x18] sm:$0xf] (%p3649_p10), %v472_v14 }
  0x76   : > { %475 = vst [vmem:[%s442_s10 + $0x1c] sm:$0xf] %v474_v15 }
  0x77 PF: > { %p3650_p7 = scmp.ne.s32.totalorder %s3641_s23, 0 }
  0x78   : > { %p3651_p8 = scmp.ne.s32.totalorder (!%p3650_p7), %s3642_s24, 0 }
  0x79   : > { %526 = sbr.rel (%p3650_p7) target bundleno = 3930 (0xf5a), region = 134 }
  0x80   : > { %3031 = dma.done.wait (%p3651_p8), [#allocation10], 256  }
  0x81   : > { %3033 = vsyncadd (%p3651_p8), [#allocation10], 4294967040 }
  0x82   : > { %3035 = dma.done.wait (%p3651_p8), [#allocation13], 1024  }
  0x83   : > { %3037 = vsyncadd (%p3651_p8), [#allocation13], 4294966272  ;;  %s541_s21 = sand.u32 1, %s3044_s13   ;;  %s2378_s30 = sshll.u32 %s3052_s15, 4 }
  0x84   : > { %s2376_s12 = sshll.u32 %s541_s21, 5  ;;  %p591_p11 = scmp.lt.s32.totalorder %s2378_s30, 31 }
  0x85   : > { %s3297_s19 = scalar_lea.vmem [#allocation15], %s2376_s12  ;;  %s3299_s28 = scalar_lea.vmem [#allocation16], %s2376_s12 }
  0x86   : > { %s3667_s30 = smov (!%p591_p11, %s2378_s30), 31  ;;  %p2380_p13 = scmp.ne.s32.totalorder %s3052_s15, 0 }
  0x87   : > { %s2379_s23 = sshll.u32 %s3667_s30, 2  ;;  %v3302_v16 = vld [vmem:[#allocation9] sm:$0xff] (!%p2380_p13)  ;;  %vm607_vm0 = vcmask (!%p2380_p13), 523264   ;;  %v3304_v17 = vld [vmem:[#allocation9 + $0x8] sm:$0xff] (!%p2380_p13)  ;;  %v3069_v19 = vmov (!%p2380_p13), 0.0   ;;  %v2819_v23 = vld [vmem:[%s3617_s2] sm:$0xff] (!%p2380_p13)  }
  0x88   : > { %s3295_s3 = scalar_lea.vmem %s3624_s9, %s2379_s23  ;;  %601 = sbr.rel (%p2380_p13) target bundleno = 3409 (0xd51), region = 158  ;;  %v605_v18 = vmul.f32 (!%p2380_p13), %v3302_v16, %v3302_v16  ;;  %1934 = vst.msk [vmem:[#allocation4] sm:$0xff] (!%p2380_p13), %vm607_vm0, %v3069_v19  ;;  %1935 = vst.msk [vmem:[#allocation4 + $0x8] sm:$0xff] (!%p2380_p13), %vm607_vm0, %v3069_v19  ;;  %v606_v20 = vmul.f32 (!%p2380_p13), %v3304_v17, %v3304_v17  ;;  %2537 = vmatprep.subr.bf16.mxu0 (!%p2380_p13), %v3069_v19  ;;  %2549 = vmatprep.subr.bf16.mxu1 (!%p2380_p13), %v3069_v19  ;;  %v2821_v25 = vld [vmem:[%s3617_s2 + $0x8] sm:$0xff] (!%p2380_p13)   ;;  %vm3070_vm1 = vmmov (!%p2380_p13), 0   ;;  %v2823_v27 = vld [vmem:[%s3617_s2 + $0x10] sm:$0xff] (!%p2380_p13)  }
  0x89   : > { %s3652_s25 = sld [smem:[#allocation24_spill]] (!%p2380_p13)  ;;  %2538 = vmatpush3.bf16.msra.mxu0 (!%p2380_p13), %v2819_v23  ;;  %2545 = vmatprep.mubr.msk.bf16.mxu0 (!%p2380_p13), %vm3070_vm1, %v3069_v19  ;;  %v2825_v29 = vld [vmem:[%s3617_s2 + $0x18] sm:$0xff] (!%p2380_p13)   ;;  %s3653_s18 = sld [smem:[#allocation23_spill]] (!%p2380_p13)  ;;  %v2828_v46 = vld [vmem:[#allocation12 + $0x8] sm:$0xff] (!%p2380_p13)   ;;  %v2829_v47 = vld [vmem:[#allocation12 + $0x10] sm:$0xff] (!%p2380_p13)   ;;  %vm878_vm2 = vcmask (!%p2380_p13), 130048  }
  0x8a   : > { %v608_v21 = vsel (!%p2380_p13), %vm607_vm0, %v605_v18, 0.0  ;;  %v611_v22 = vsel (!%p2380_p13), %vm607_vm0, %v606_v20, 0.0  ;;  %2539 = vmatprep.subr.bf16.mxu0 (!%p2380_p13), %v3069_v19  ;;  %2557 = vmatprep.mubr.msk.bf16.mxu1 (!%p2380_p13), %vm3070_vm1, %v3069_v19  ;;  %v2827_v44 = vld [vmem:[#allocation12] sm:$0xff] (!%p2380_p13)   ;;  %v2830_v48 = vld [vmem:[#allocation12 + $0x18] sm:$0xff] (!%p2380_p13)   ;;  %vm999_vm3 = vcmask (!%p2380_p13), 1043456   ;;  %vm971_vm4 = vcmask (!%p2380_p13), 64512  }
  0x8b   : > { %609 = vadd.xlane.f32.xlu0 (!%p2380_p13), %v608_v21  ;;  %s3071_s11 = smov (!%p2380_p13), 112   ;;  %s3072_s22 = smov (!%p2380_p13), 96   ;;  %vm1334_vm5 = vcmask (!%p2380_p13), 261248   ;;  %vm1579_vm6 = vcmask (!%p2380_p13), 392448   ;;  %vm1824_vm7 = vcmask (!%p2380_p13), 523648  }
  0x8c   : > { %s3073_s29 = smov (!%p2380_p13), 80   ;;  %s3074_s27 = smov (!%p2380_p13), 16  }
  0x8d   : > { %2540 = vmatpush3.bf16.msra.mxu0 (!%p2380_p13), %v2821_v25  ;;  %s3075_s26 = smov (!%p2380_p13), 32   ;;  %s3076_s6 = smov (!%p2380_p13), 48  }
  0x8e   : > { %2541 = vmatprep.subr.bf16.mxu0 (!%p2380_p13), %v3069_v19  ;;  %s3654_s30 = sld [smem:[#allocation25_spill]] (!%p2380_p13) }
  0x8f   : > { %612 = vadd.xlane.f32.xlu0 %v611_v22  ;;  %v2820_v24 = vld [vmem:[%s3652_s25] sm:$0xff]   ;;  %v2822_v26 = vld [vmem:[%s3652_s25 + $0x8] sm:$0xff]   ;;  %v2824_v28 = vld [vmem:[%s3652_s25 + $0x10] sm:$0xff]  }
  0x90   : > { %2550 = vmatpush3.bf16.msra.mxu1 %v2820_v24  ;;  %v2826_v30 = vld [vmem:[%s3652_s25 + $0x18] sm:$0xff]   ;;  %v2381_v40 = vld [vmem:[%s3653_s18] ss:$0 sm:$0xff] }
  0x91   : > { %2551 = vmatprep.subr.bf16.mxu1 %v3069_v19  ;;  %2542 = vmatpush3.bf16.msra.mxu0 %v2823_v27 }
  0x92   : > { %2543 = vmatprep.subr.bf16.mxu0 %v3069_v19 }
  0x94   : > { %2552 = vmatpush3.bf16.msra.mxu1 %v2822_v26 }
  0x95   : > { %2553 = vmatprep.subr.bf16.mxu1 %v3069_v19  ;;  %2544 = vmatpush3.bf16.msra.mxu0 %v2825_v29 }
  0x96   : > { %2561 = vmatprep.subr.bf16.mxu0 %v3069_v19 }
  0x98   : > { %2554 = vmatpush3.bf16.msra.mxu1 %v2824_v28 }
  0x99   : > { %2555 = vmatprep.subr.bf16.mxu1 %v3069_v19 }
  0x9c   : > { %2556 = vmatpush3.bf16.msra.mxu1 %v2826_v30 }
  0x9d   : > { %2573 = vmatprep.subr.bf16.mxu1 %v3069_v19 }
 0x118   : > { %v610_v31 = vpop.xlane.xlu0 %609 }
 0x119   : > { %v615_v32 = vmul.f32 0.015625, %v610_v31 }
 0x11b   : > { %v617_v33 = vadd.f32 1e-06, %v615_v32 }
 0x11c   : > { %v613_v34 = vpop.xlane.xlu0 %612 }
 0x11d   : > { %2840 = vrsqrt.f32 %v617_v33  ;;  %v616_v35 = vmul.f32 0.015625, %v613_v34 }
 0x11f   : > { %v618_v36 = vadd.f32 1e-06, %v616_v35 }
 0x121   : > { %2842 = vrsqrt.f32 %v618_v36 }
 0x127   : > { %v2841_v37 = vpop.eup %2840 }
 0x128   : > { %v621_v38 = vmul.f32 %v2841_v37, %v3302_v16 }
 0x12a   : > { %v629_v42 = vmul.f32 %v2381_v40, %v621_v38 }
 0x12b   : > { %v2843_v39 = vpop.eup %2842 }
 0x12c   : > { %v622_v41 = vmul.f32 %v2843_v39, %v3304_v17 }
 0x12e   : > { %v630_v43 = vmul.f32 %v2381_v40, %v622_v41 }
 0x130   : > { %v631_v45 = vpack.c.bf16 %v630_v43, %v629_v42 }
 0x132   : > { %2546 = vmatmul.mubr.msk.bf16.vlgmr.msra.gmra.mrb[0].mxu0 %vm607_vm0, %v631_v45  ;;  %2558 = vmatmul.mubr.msk.bf16.vlgmr.msra.gmra.mrb[0].mxu1 %vm607_vm0, %v631_v45 }
 0x133   : > { %2562 = vmatpush3.bf16.msra.mxu0 %v2827_v44  ;;  %2569 = vmatprep.mubr.msk.bf16.mxu0 %vm3070_vm1, %v3069_v19 }
 0x134   : > { %2563 = vmatprep.subr.bf16.mxu0 %v3069_v19  ;;  %2575 = vmatprep.mubr.msk.bf16.mxu1 %vm3070_vm1, %v3069_v19 }
 0x137   : > { %2564 = vmatpush3.bf16.msra.mxu0 %v2828_v46 }
 0x138   : > { %2565 = vmatprep.subr.bf16.mxu0 %v3069_v19 }
 0x13b   : > { %2566 = vmatpush3.bf16.msra.mxu0 %v2829_v47 }
 0x13c   : > { %2567 = vmatprep.subr.bf16.mxu0 %v3069_v19 }
 0x13f   : > { %2568 = vmatpush3.bf16.msra.mxu0 %v2830_v48 }
 0x140   : > { %2597 = vmatprep.subr.bf16.mxu0 %v3069_v19 }
 0x142   : > { %2570 = vmatmul.mubr.msk.bf16.vlgmr.msra.gmra.mrb[4].mxu0 %vm607_vm0, %v631_v45 }
 0x143   : > { %2599 = vmatprep.mubr.msk.bf16.mxu0 %vm3070_vm1, %v3069_v19 }
 0x205   : > { %v701_v49 = vpop.f32.mrb[0].mxu0  ;;  %v776_v50 = vpop.f32.mrb[0].mxu1 }
 0x206   : > { %v2547_v51 = vpop.f32.mrb[1].mxu0  ;;  %v2559_v52 = vpop.f32.mrb[1].mxu1 }
 0x207   : > { %v704_v53 = vpop.f32.mrb[2].mxu0  ;;  %v779_v54 = vpop.f32.mrb[2].mxu1 }
 0x208   : > { %v708_v55 = vpack.c.bf16 %v704_v53, %v701_v49  ;;  %v783_v56 = vpack.c.bf16 %v779_v54, %v776_v50  ;;  %v2548_v57 = vpop.f32.mrb[3].mxu0  ;;  %v2560_v58 = vpop.f32.mrb[3].mxu1 }
 0x20a   : > { %709 = vst.msk [vmem:[#allocation5] sm:$0xff] %vm607_vm0, %v708_v55  ;;  %784 = vst.msk [vmem:[#allocation6] sm:$0xff] %vm607_vm0, %v783_v56 }
 0x211   : > { %v866_v59 = vld [vmem:[#allocation6] sm:$0xff]  ;;  %v860_v1 = vld [vmem:[#allocation5] sm:$0xff] }
 0x212   : > { %v3374_v60 = vcombine.low %v866_v59, %v866_v59  ;;  %v3379_v4 = vcombine.high %v866_v59, %v866_v59  ;;  %v3382_v5 = vcombine.low %v860_v1, %v860_v1  ;;  %v3391_v8 = vcombine.high %v860_v1, %v860_v1 }
 0x214   : > { %v883_v61 = vsel %vm878_vm2, %v3374_v60, 0  ;;  %v929_v6 = vsel %vm878_vm2, %v3379_v4, 0 }
 0x215   : > { %v851_v62 = vpop.f32.mrb[4].mxu0  ;;  %2574 = vmatpush3.bf16.xpose.msra.mxu1 %v883_v61 }
 0x216   : > { %v2571_v63 = vpop.f32.mrb[5].mxu0  ;;  %2579 = vmatprep.subr.bf16.mxu1 %v3069_v19 }
 0x217   : > { %v854_v0 = vpop.f32.mrb[6].mxu0 }
 0x218   : > { %v858_v2 = vpack.c.bf16 %v854_v0, %v851_v62  ;;  %v2572_v3 = vpop.f32.mrb[7].mxu0 }
 0x21a   : > { %859 = vst.msk [vmem:[#allocation7] sm:$0xff] %vm607_vm0, %v858_v2 }
 0x21c   : > { %2576 = vmatmul.mubr.msk.bf16.vlgmr.msra.gmra.mrb[4].mxu1 %vm878_vm2, %v3382_v5 }
 0x21d   : > { %2580 = vmatpush3.bf16.xpose.msra.mxu1 %v929_v6  ;;  %2581 = vmatprep.mubr.msk.bf16.mxu1 %vm3070_vm1, %v3069_v19 }
 0x21e   : > { %2585 = vmatprep.subr.bf16.mxu1 %v3069_v19 }
 0x221   : > { %v872_v7 = vld [vmem:[#allocation7] sm:$0xff] }
 0x222   : > { %v3393_v9 = vcombine.low %v872_v7, %v872_v7  ;;  %v3416_v42 = vcombine.high %v872_v7, %v872_v7 }
 0x224   : > { %2582 = vmatmul.mubr.msk.bf16.vlgmr.msra.gmra.mrb[8].mxu1 %vm878_vm2, %v3391_v8  ;;  %v1001_v10 = vsel %vm999_vm3, %v3393_v9, 0  ;;  %v1047_v44 = vsel %vm999_vm3, %v3416_v42, 0 }
 0x225   : > { %2586 = vmatpush3.bf16.msra.mxu1 %v1001_v10  ;;  %2587 = vmatprep.mubr.msk.bf16.mxu1 %vm3070_vm1, %v3069_v19 }
 0x226   : > { %2591 = vmatprep.subr.bf16.mxu1 %v3069_v19 }
 0x2ef   : > { %v919_v11 = vpop.f32.mrb[4].mxu1 }
 0x2f0   : > { %v2577_v12 = vpop.f32.mrb[5].mxu1  ;;  %v972_v13 = vsel %vm971_vm4, %v919_v11, -inf }
 0x2f1   : > { %973 = vmax.xlane.f32.xlu1 %v972_v13  ;;  %v922_v14 = vpop.f32.mrb[6].mxu1 }
 0x2f2   : > { %v2578_v15 = vpop.f32.mrb[7].mxu1 }
 0x2f7   : > { %v965_v18 = vpop.f32.mrb[8].mxu1 }
 0x2f8   : > { %v2583_v20 = vpop.f32.mrb[9].mxu1  ;;  %v975_v21 = vsel %vm971_vm4, %v965_v18, -inf }
 0x2f9   : > { %976 = vmax.xlane.f32.xlu1 %v975_v21  ;;  %v968_v22 = vpop.f32.mrb[10].mxu1 }
 0x2fa   : > { %v2584_v23 = vpop.f32.mrb[11].mxu1 }
 0x30a   : > { %1159 = vrot.lane.b32.xlu1 %v3379_v4, %s3071_s11 }
 0x37e   : > { %v974_v24 = vpop.xlane.xlu1 %973 }
 0x37f   : > { %v978_v25 = vsub.f32 %v919_v11, %v974_v24 }
 0x381   : > { %v980_v26 = vmul.f32 1.442695, %v978_v25 }
 0x383   : > { %2844 = vpow2.f32 %v980_v26 }
 0x386   : > { %v977_v27 = vpop.xlane.xlu1 %976 }
 0x387   : > { %v979_v28 = vsub.f32 %v965_v18, %v977_v27 }
 0x389   : > { %v982_v29 = vmul.f32 1.442695, %v979_v28 }
 0x38a   : > { %v1160_v35 = vpop.permute.xlu1 %1159 }
 0x38b   : > { %2846 = vpow2.f32 %v982_v29  ;;  %v1165_v48 = vsel %vm878_vm2, %v1160_v35, 0 }
 0x38d   : > { %v2845_v30 = vpop.eup %2844 }
 0x38e   : > { %v984_v31 = vsel %vm971_vm4, %v2845_v30, 0.0 }
 0x38f   : > { %985 = vadd.xlane.f32.xlu0 %v984_v31 }
 0x395   : > { %v2847_v32 = vpop.eup %2846 }
 0x396   : > { %v987_v33 = vsel %vm971_vm4, %v2847_v32, 0.0 }
 0x397   : > { %988 = vadd.xlane.f32.xlu1 %v987_v33 }
 0x3a5   : > { %1107 = vrot.lane.b32.xlu0 %v3374_v60, %s3071_s11 }
 0x3a8   : > { %1104 = vrot.lane.b32.xlu1 %v3382_v5, %s3071_s11 }
 0x3ac   : > { %1156 = vrot.lane.b32.xlu1 %v3391_v8, %s3071_s11 }
 0x41c   : > { %v986_v34 = vpop.xlane.xlu0 %985 }
 0x41d   : > { %2848 = vrcp.f32 %v986_v34 }
 0x420   : > { %v1108_v36 = vpop.permute.xlu0 %1107 }
 0x421   : > { %v1113_v37 = vsel %vm878_vm2, %v1108_v36, 0 }
 0x422   : > { %2598 = vmatpush3.bf16.xpose.msra.mxu0 %v1113_v37 }
 0x423   : > { %2609 = vmatprep.subr.bf16.mxu0 %v3069_v19 }
 0x424   : > { %v989_v38 = vpop.xlane.xlu1 %988 }
 0x425   : > { %2850 = vrcp.f32 %v989_v38 }
 0x427   : > { %v2849_v39 = vpop.eup %2848 }
 0x428   : > { %v992_v40 = vmul.f32 %v2849_v39, %v2845_v30  ;;  %v1105_v41 = vpop.permute.xlu1 %1104 }
 0x429   : > { %2600 = vmatmul.mubr.msk.bf16.vlgmr.msra.gmra.mrb[8].mxu0 %vm878_vm2, %v1105_v41 }
 0x42a   : > { %v994_v43 = vpack.c.bf16 %v992_v40, %v992_v40  ;;  %2611 = vmatprep.mubr.msk.bf16.mxu0 %vm3070_vm1, %v3069_v19 }
 0x42c   : > { %2588 = vmatmul.mubr.msk.bf16.vlgmr.msra.gmra.mrb[12].mxu1 %vm971_vm4, %v994_v43  ;;  %v1157_v49 = vpop.permute.xlu1 %1156 }
 0x42d   : > { %2592 = vmatpush3.bf16.msra.mxu1 %v1047_v44  ;;  %2593 = vmatprep.mubr.msk.bf16.mxu1 %vm3070_vm1, %v3069_v19 }
 0x42e   : > { %2603 = vmatprep.subr.bf16.mxu1 %v3069_v19 }
 0x42f   : > { %v2851_v45 = vpop.eup %2850 }
 0x430   : > { %v993_v46 = vmul.f32 %v2851_v45, %v2847_v32 }
 0x432   : > { %v995_v47 = vpack.c.bf16 %v993_v46, %v993_v46 }
 0x434   : > { %2594 = vmatmul.mubr.msk.bf16.vlgmr.msra.gmra.mrb[16].mxu1 %vm971_vm4, %v995_v47 }
 0x435   : > { %2605 = vmatprep.mubr.msk.bf16.mxu1 %vm3070_vm1, %v3069_v19 }
 0x436   : > { %2604 = vmatpush3.bf16.xpose.msra.mxu1 %v1165_v48 }
 0x437   : > { %2615 = vmatprep.subr.bf16.mxu1 %v3069_v19 }
 0x43d   : > { %2606 = vmatmul.mubr.msk.bf16.vlgmr.msra.gmra.mrb[20].mxu1 %vm878_vm2, %v1157_v49 }
 0x43e   : > { %2617 = vmatprep.mubr.msk.bf16.mxu1 %vm3070_vm1, %v3069_v19 }
 0x4fc   : > { %v1149_v50 = vpop.f32.mrb[8].mxu0 }
 0x4fd   : > { %v2601_v51 = vpop.f32.mrb[9].mxu0  ;;  %v1207_v52 = vsel %vm971_vm4, %v1149_v50, -inf }
 0x4fe   : > { %1208 = vmax.xlane.f32.xlu0 %v1207_v52  ;;  %v1152_v53 = vpop.f32.mrb[10].mxu0 }
 0x4ff   : > { %v1037_v54 = vpop.f32.mrb[12].mxu1  ;;  %v2602_v55 = vpop.f32.mrb[11].mxu0 }
 0x500   : > { %v2589_v56 = vpop.f32.mrb[13].mxu1 }
 0x501   : > { %v1040_v57 = vpop.f32.mrb[14].mxu1 }
 0x502   : > { %v2590_v58 = vpop.f32.mrb[15].mxu1 }
 0x507   : > { %v1083_v59 = vpop.f32.mrb[16].mxu1 }
 0x508   : > { %v1089_v61 = vpack.c.bf16 %v1083_v59, %v1037_v54  ;;  %v2595_v62 = vpop.f32.mrb[17].mxu1 }
 0x509   : > { %v1086_v63 = vpop.f32.mrb[18].mxu1 }
 0x50a   : > { %1090 = vst.msk [vmem:[#allocation8] sm:$0xff] %vm878_vm2, %v1089_v61  ;;  %v2596_v0 = vpop.f32.mrb[19].mxu1 }
 0x510   : > { %v1201_v1 = vpop.f32.mrb[20].mxu1 }
 0x511   : > { %v2607_v2 = vpop.f32.mrb[21].mxu1  ;;  %v1210_v3 = vsel %vm971_vm4, %v1201_v1, -inf }
 0x512   : > { %1211 = vmax.xlane.f32.xlu1 %v1210_v3  ;;  %v1204_v6 = vpop.f32.mrb[22].mxu1 }
 0x513   : > { %v2608_v7 = vpop.f32.mrb[23].mxu1 }
 0x523   : > { %1281 = vrot.lane.b32.xlu1 %v3416_v42, %s3071_s11 }
 0x527   : > { %1352 = vrot.lane.b32.xlu1 %v3374_v60, %s3072_s22 }
 0x52b   : > { %1404 = vrot.lane.b32.xlu1 %v3379_v4, %s3072_s22 }
 0x52f   : > { %1401 = vrot.lane.b32.xlu1 %v3391_v8, %s3072_s22 }
 0x58b   : > { %v1209_v10 = vpop.xlane.xlu0 %1208 }
 0x58c   : > { %v1213_v11 = vsub.f32 %v1149_v50, %v1209_v10 }
 0x58e   : > { %v1215_v12 = vmul.f32 1.442695, %v1213_v11 }
 0x590   : > { %2852 = vpow2.f32 %v1215_v12 }
 0x59a   : > { %v2853_v13 = vpop.eup %2852 }
 0x59b   : > { %v1219_v14 = vsel %vm971_vm4, %v2853_v13, 0.0 }
 0x59c   : > { %1220 = vadd.xlane.f32.xlu0 %v1219_v14 }
 0x59f   : > { %v1212_v15 = vpop.xlane.xlu1 %1211 }
 0x5a0   : > { %v1214_v18 = vsub.f32 %v1201_v1, %v1212_v15 }
 0x5a2   : > { %v1217_v20 = vmul.f32 1.442695, %v1214_v18 }
 0x5a3   : > { %v1282_v21 = vpop.permute.xlu1 %1281 }
 0x5a4   : > { %2854 = vpow2.f32 %v1217_v20  ;;  %v1287_v22 = vsel %vm999_vm3, %v1282_v21, 0 }
 0x5a5   : > { %2616 = vmatpush3.bf16.msra.mxu1 %v1287_v22 }
 0x5a6   : > { %2627 = vmatprep.subr.bf16.mxu1 %v3069_v19 }
 0x5a7   : > { %v1353_v31 = vpop.permute.xlu1 %1352 }
 0x5a8   : > { %v1358_v36 = vsel %vm878_vm2, %v1353_v31, 0 }
 0x5ab   : > { %v1405_v35 = vpop.permute.xlu1 %1404 }
 0x5ac   : > { %v1410_v38 = vsel %vm878_vm2, %v1405_v35, 0 }
 0x5ae   : > { %v2855_v23 = vpop.eup %2854 }
 0x5af   : > { %v1222_v24 = vsel %vm971_vm4, %v2855_v23, 0.0  ;;  %v1402_v40 = vpop.permute.xlu1 %1401 }
 0x5b0   : > { %1223 = vadd.xlane.f32.xlu0 %v1222_v24 }
 0x5c6   : > { %1232 = vrot.lane.b32.xlu0 %v3393_v9, %s3071_s11 }
 0x5ca   : > { %1349 = vrot.lane.b32.xlu0 %v3382_v5, %s3072_s22 }
 0x629   : > { %v1221_v25 = vpop.xlane.xlu0 %1220 }
 0x62a   : > { %2856 = vrcp.f32 %v1221_v25 }
 0x634   : > { %v2857_v26 = vpop.eup %2856 }
 0x635   : > { %v1227_v28 = vmul.f32 %v2857_v26, %v2853_v13 }
 0x637   : > { %v1229_v32 = vpack.c.bf16 %v1227_v28, %v1227_v28 }
 0x63d   : > { %v1224_v27 = vpop.xlane.xlu0 %1223 }
 0x63e   : > { %2858 = vrcp.f32 %v1224_v27 }
 0x641   : > { %v1233_v29 = vpop.permute.xlu0 %1232 }
 0x642   : > { %v1238_v30 = vsel %vm999_vm3, %v1233_v29, 0 }
 0x643   : > { %2610 = vmatpush3.bf16.msra.mxu0 %v1238_v30 }
 0x644   : > { %2621 = vmatprep.subr.bf16.mxu0 %v3069_v19 }
 0x645   : > { %v1350_v39 = vpop.permute.xlu0 %1349 }
 0x646   : > { %2612 = vmatmul.mubr.msk.bf16.vlgmr.msra.gmra.mrb[12].mxu0 %vm971_vm4, %v1229_v32 }
 0x647   : > { %2623 = vmatprep.mubr.msk.bf16.mxu0 %vm3070_vm1, %v3069_v19 }
 0x648   : > { %v2859_v33 = vpop.eup %2858 }
 0x649   : > { %v1228_v34 = vmul.f32 %v2859_v33, %v2855_v23 }
 0x64b   : > { %v1230_v37 = vpack.c.bf16 %v1228_v34, %v1228_v34 }
 0x64c   : > { %2622 = vmatpush3.bf16.xpose.msra.mxu0 %v1358_v36 }
 0x64d   : > { %2618 = vmatmul.mubr.msk.bf16.vlgmr.msra.gmra.mrb[24].mxu1 %vm971_vm4, %v1230_v37  ;;  %2633 = vmatprep.subr.bf16.mxu0 %v3069_v19 }
 0x64e   : > { %2628 = vmatpush3.bf16.xpose.msra.mxu1 %v1410_v38  ;;  %2629 = vmatprep.mubr.msk.bf16.mxu1 %vm3070_vm1, %v3069_v19 }
 0x64f   : > { %2639 = vmatprep.subr.bf16.mxu1 %v3069_v19 }
 0x653   : > { %2624 = vmatmul.mubr.msk.bf16.vlgmr.msra.gmra.mrb[16].mxu0 %vm878_vm2, %v1350_v39 }
 0x654   : > { %2635 = vmatprep.mubr.msk.bf16.mxu0 %vm3070_vm1, %v3069_v19 }
 0x655   : > { %2630 = vmatmul.mubr.msk.bf16.vlgmr.msra.gmra.mrb[28].mxu1 %vm878_vm2, %v1402_v40 }
 0x656   : > { %2641 = vmatprep.mubr.msk.bf16.mxu1 %vm3070_vm1, %v3069_v19 }
 0x719   : > { %v3472_v41 = vpop.f32.mrb[12].mxu0 }
 0x71a   : > { %v2613_v43 = vpop.f32.mrb[13].mxu0 }
 0x71b   : > { %v1277_v44 = vpop.f32.mrb[14].mxu0 }
 0x71c   : > { %v2614_v45 = vpop.f32.mrb[15].mxu0 }
 0x720   : > { %v3474_v46 = vpop.f32.mrb[24].mxu1 }
 0x721   : > { %v1329_v47 = vpack.c.bf16 %v3474_v46, %v3472_v41  ;;  %v2619_v48 = vpop.f32.mrb[25].mxu1 }
 0x722   : > { %v1326_v49 = vpop.f32.mrb[26].mxu1 }
 0x723   : > { %v2620_v50 = vpop.f32.mrb[27].mxu1 }
 0x726   : > { %v1394_v51 = vpop.f32.mrb[16].mxu0 }
 0x727   : > { %v2625_v52 = vpop.f32.mrb[17].mxu0  ;;  %v1452_v53 = vsel %vm971_vm4, %v1394_v51, -inf }
 0x728   : > { %v1446_v54 = vpop.f32.mrb[28].mxu1  ;;  %1453 = vmax.xlane.f32.xlu0 %v1452_v53  ;;  %v1397_v55 = vpop.f32.mrb[18].mxu0 }
 0x729   : > { %v2626_v56 = vpop.f32.mrb[19].mxu0  ;;  %v2631_v57 = vpop.f32.mrb[29].mxu1  ;;  %v1455_v58 = vsel %vm971_vm4, %v1446_v54, -inf }
 0x72a   : > { %1456 = vmax.xlane.f32.xlu1 %v1455_v58  ;;  %v1449_v59 = vpop.f32.mrb[30].mxu1 }
 0x72b   : > { %v2632_v61 = vpop.f32.mrb[31].mxu1 }
 0x73b   : > { %1526 = vrot.lane.b32.xlu1 %v3416_v42, %s3072_s22 }
 0x73f   : > { %1597 = vrot.lane.b32.xlu1 %v3374_v60, %s3073_s29 }
 0x743   : > { %1649 = vrot.lane.b32.xlu1 %v3379_v4, %s3073_s29 }
 0x747   : > { %1646 = vrot.lane.b32.xlu1 %v3391_v8, %s3073_s29 }
 0x7b5   : > { %v1454_v62 = vpop.xlane.xlu0 %1453 }
 0x7b6   : > { %v1458_v63 = vsub.f32 %v1394_v51, %v1454_v62 }
 0x7b7   : > { %v1457_v0 = vpop.xlane.xlu1 %1456 }
 0x7b8   : > { %v1460_v1 = vmul.f32 1.442695, %v1458_v63  ;;  %v1459_v2 = vsub.f32 %v1446_v54, %v1457_v0 }
 0x7ba   : > { %2860 = vpow2.f32 %v1460_v1  ;;  %v1462_v3 = vmul.f32 1.442695, %v1459_v2 }
 0x7bb   : > { %v1527_v6 = vpop.permute.xlu1 %1526 }
 0x7bc   : > { %2862 = vpow2.f32 %v1462_v3  ;;  %v1532_v7 = vsel %vm999_vm3, %v1527_v6, 0 }
 0x7bd   : > { %2640 = vmatpush3.bf16.msra.mxu1 %v1532_v7 }
 0x7be   : > { %2651 = vmatprep.subr.bf16.mxu1 %v3069_v19 }
 0x7bf   : > { %v1598_v18 = vpop.permute.xlu1 %1597 }
 0x7c3   : > { %v1650_v24 = vpop.permute.xlu1 %1649 }
 0x7c4   : > { %v2861_v60 = vpop.eup %2860  ;;  %v1655_v26 = vsel %vm878_vm2, %v1650_v24, 0 }
 0x7c5   : > { %v1464_v4 = vsel %vm971_vm4, %v2861_v60, 0.0 }
 0x7c6   : > { %v2863_v10 = vpop.eup %2862  ;;  %1465 = vadd.xlane.f32.xlu0 %v1464_v4 }
 0x7c7   : > { %v1467_v8 = vsel %vm971_vm4, %v2863_v10, 0.0  ;;  %v1647_v28 = vpop.permute.xlu1 %1646 }
 0x7ca   : > { %1468 = vadd.xlane.f32.xlu0 %v1467_v8  ;;  %v2837_v8 = vld [vmem:[#allocation14 + $0x8] sm:$0xff]  }
 0x7e0   : > { %1477 = vrot.lane.b32.xlu0 %v3393_v9, %s3072_s22 }
 0x7e4   : > { %1594 = vrot.lane.b32.xlu0 %v3382_v5, %s3073_s29  ;;  %v1603_v5 = vsel %vm878_vm2, %v1598_v18, 0 }
 0x853   : > { %v1466_v11 = vpop.xlane.xlu0 %1465 }
 0x854   : > { %2864 = vrcp.f32 %v1466_v11  ;;  %v2838_v11 = vld [vmem:[#allocation14 + $0x10] sm:$0xff]  }
 0x857   : > { %v1469_v12 = vpop.xlane.xlu0 %1468 }
 0x858   : > { %2866 = vrcp.f32 %v1469_v12  ;;  %v2839_v12 = vld [vmem:[#allocation14 + $0x18] sm:$0xff]  }
 0x85b   : > { %v1478_v13 = vpop.permute.xlu0 %1477 }
 0x85c   : > { %v1483_v14 = vsel %vm999_vm3, %v1478_v13, 0 }
 0x85d   : > { %2634 = vmatpush3.bf16.msra.mxu0 %v1483_v14 }
 0x85e   : > { %v2865_v15 = vpop.eup %2864  ;;  %2645 = vmatprep.subr.bf16.mxu0 %v3069_v19 }
 0x85f   : > { %v1472_v20 = vmul.f32 %v2865_v15, %v2861_v60  ;;  %v1595_v27 = vpop.permute.xlu0 %1594 }
 0x861   : > { %v1474_v21 = vpack.c.bf16 %v1472_v20, %v1472_v20 }
 0x862   : > { %v2867_v22 = vpop.eup %2866 }
 0x863   : > { %v1473_v23 = vmul.f32 %v2867_v22, %v2863_v10  ;;  %2636 = vmatmul.mubr.msk.bf16.vlgmr.msra.gmra.mrb[20].mxu0 %vm971_vm4, %v1474_v21  ;;  %v2836_v10 = vld [vmem:[#allocation14] sm:$0xff]  }
 0x864   : > { %2647 = vmatprep.mubr.msk.bf16.mxu0 %vm3070_vm1, %v3069_v19 }
 0x865   : > { %v1475_v25 = vpack.c.bf16 %v1473_v23, %v1473_v23 }
 0x866   : > { %2646 = vmatpush3.bf16.xpose.msra.mxu0 %v1603_v5 }
 0x867   : > { %2642 = vmatmul.mubr.msk.bf16.vlgmr.msra.gmra.mrb[32].mxu1 %vm971_vm4, %v1475_v25  ;;  %2657 = vmatprep.subr.bf16.mxu0 %v3069_v19 }
 0x868   : > { %2652 = vmatpush3.bf16.xpose.msra.mxu1 %v1655_v26  ;;  %2653 = vmatprep.mubr.msk.bf16.mxu1 %vm3070_vm1, %v3069_v19 }
 0x869   : > { %2663 = vmatprep.subr.bf16.mxu1 %v3069_v19 }
 0x86d   : > { %2648 = vmatmul.mubr.msk.bf16.vlgmr.msra.gmra.mrb[24].mxu0 %vm878_vm2, %v1595_v27 }
 0x86e   : > { %2659 = vmatprep.mubr.msk.bf16.mxu0 %vm3070_vm1, %v3069_v19 }
 0x86f   : > { %2654 = vmatmul.mubr.msk.bf16.vlgmr.msra.gmra.mrb[36].mxu1 %vm878_vm2, %v1647_v28 }
 0x870   : > { %2665 = vmatprep.mubr.msk.bf16.mxu1 %vm3070_vm1, %v3069_v19 }
 0x936   : > { %v1519_v29 = vpop.f32.mrb[20].mxu0 }
 0x937   : > { %v2637_v30 = vpop.f32.mrb[21].mxu0 }
 0x938   : > { %v1522_v31 = vpop.f32.mrb[22].mxu0 }
 0x939   : > { %v2638_v32 = vpop.f32.mrb[23].mxu0 }
 0x93a   : > { %v1568_v33 = vpop.f32.mrb[32].mxu1 }
 0x93b   : > { %v1574_v34 = vpack.c.bf16 %v1568_v33, %v1519_v29  ;;  %v2643_v35 = vpop.f32.mrb[33].mxu1 }
 0x93c   : > { %v1571_v36 = vpop.f32.mrb[34].mxu1 }
 0x93d   : > { %v2644_v37 = vpop.f32.mrb[35].mxu1 }
 0x940   : > { %v1639_v38 = vpop.f32.mrb[24].mxu0 }
 0x941   : > { %v2649_v39 = vpop.f32.mrb[25].mxu0  ;;  %v1697_v40 = vsel %vm971_vm4, %v1639_v38, -inf }
 0x942   : > { %v1691_v43 = vpop.f32.mrb[36].mxu1  ;;  %1698 = vmax.xlane.f32.xlu0 %v1697_v40  ;;  %v1642_v44 = vpop.f32.mrb[26].mxu0 }
 0x943   : > { %v2650_v45 = vpop.f32.mrb[27].mxu0  ;;  %v2655_v48 = vpop.f32.mrb[37].mxu1  ;;  %v1700_v49 = vsel %vm971_vm4, %v1691_v43, -inf  ;;  %v2442_v44 = vld [vmem:[%s3654_s30] ss:$0 sm:$0xff] }
 0x944   : > { %1701 = vmax.xlane.f32.xlu1 %v1700_v49  ;;  %v1694_v50 = vpop.f32.mrb[38].mxu1 }
 0x945   : > { %v2656_v51 = vpop.f32.mrb[39].mxu1 }
 0x955   : > { %1771 = vrot.lane.b32.xlu1 %v3416_v42, %s3073_s29 }
 0x959   : > { %1331 = vrot.lane.b32.xlu1 %v1329_v47, %s3074_s27 }
 0x95d   : > { %1576 = vrot.lane.b32.xlu1 %v1574_v34, %s3075_s26 }
 0x9cf   : > { %v1699_v52 = vpop.xlane.xlu0 %1698 }
 0x9d0   : > { %v1703_v53 = vsub.f32 %v1639_v38, %v1699_v52 }
 0x9d1   : > { %v1702_v54 = vpop.xlane.xlu1 %1701 }
 0x9d2   : > { %v1705_v55 = vmul.f32 1.442695, %v1703_v53  ;;  %v1704_v56 = vsub.f32 %v1691_v43, %v1702_v54 }
 0x9d4   : > { %2868 = vpow2.f32 %v1705_v55  ;;  %v1707_v57 = vmul.f32 1.442695, %v1704_v56 }
 0x9d5   : > { %v1772_v58 = vpop.permute.xlu1 %1771 }
 0x9d6   : > { %2870 = vpow2.f32 %v1707_v57  ;;  %v1777_v59 = vsel %vm999_vm3, %v1772_v58, 0 }
 0x9d7   : > { %2664 = vmatpush3.bf16.msra.mxu1 %v1777_v59 }
 0x9d9   : > { %v1332_v42 = vpop.permute.xlu1 %1331 }
 0x9da   : > { %1335 = vst.msk [vmem:[#allocation8] sm:$0xff] %vm1334_vm5, %v1332_v42 }
 0x9dd   : > { %v1577_v41 = vpop.permute.xlu1 %1576 }
 0x9de   : > { %v2869_v46 = vpop.eup %2868  ;;  %1580 = vst.msk [vmem:[#allocation8] sm:$0xff] %vm1579_vm6, %v1577_v41 }
 0x9df   : > { %v1709_v47 = vsel %vm971_vm4, %v2869_v46, 0.0 }
 0x9e0   : > { %v2871_v61 = vpop.eup %2870  ;;  %1710 = vadd.xlane.f32.xlu0 %v1709_v47 }
 0x9e1   : > { %v1712_v62 = vsel %vm971_vm4, %v2871_v61, 0.0 }
 0x9e4   : > { %1713 = vadd.xlane.f32.xlu0 %v1712_v62 }
 0x9fa   : > { %1722 = vrot.lane.b32.xlu0 %v3393_v9, %s3073_s29 }
 0xa6d   : > { %v1711_v63 = vpop.xlane.xlu0 %1710 }
 0xa6e   : > { %2872 = vrcp.f32 %v1711_v63 }
 0xa71   : > { %v1714_v0 = vpop.xlane.xlu0 %1713 }
 0xa72   : > { %2874 = vrcp.f32 %v1714_v0 }
 0xa75   : > { %v1723_v1 = vpop.permute.xlu0 %1722 }
 0xa76   : > { %v1728_v2 = vsel %vm999_vm3, %v1723_v1, 0 }
 0xa77   : > { %2658 = vmatpush3.bf16.msra.mxu0 %v1728_v2 }
 0xa78   : > { %v2873_v3 = vpop.eup %2872  ;;  %2669 = vmatprep.subr.bf16.mxu0 %v3069_v19 }
 0xa79   : > { %v1717_v6 = vmul.f32 %v2873_v3, %v2869_v46 }
 0xa7b   : > { %v1719_v7 = vpack.c.bf16 %v1717_v6, %v1717_v6 }
 0xa7c   : > { %v2875_v60 = vpop.eup %2874 }
 0xa7d   : > { %v1718_v4 = vmul.f32 %v2875_v60, %v2871_v61  ;;  %2660 = vmatmul.mubr.msk.bf16.vlgmr.msra.gmra.mrb[28].mxu0 %vm971_vm4, %v1719_v7 }
 0xa7e   : > { %2677 = vmatprep.mubr.msk.bf16.mxu0 %vm3070_vm1, %v3069_v19  ;;  %2670 = vmatpush3.bf16.msra.mxu0 %v2836_v10 }
 0xa7f   : > { %v1720_v9 = vpack.c.bf16 %v1718_v4, %v1718_v4  ;;  %2671 = vmatprep.subr.bf16.mxu0 %v3069_v19 }
 0xa81   : > { %2666 = vmatmul.mubr.msk.bf16.vlgmr.msra.gmra.mrb[40].mxu1 %vm971_vm4, %v1720_v9 }
 0xa82   : > { %2672 = vmatpush3.bf16.msra.mxu0 %v2837_v8 }
 0xa83   : > { %2673 = vmatprep.subr.bf16.mxu0 %v3069_v19 }
 0xa86   : > { %2674 = vmatpush3.bf16.msra.mxu0 %v2838_v11 }
 0xa87   : > { %2675 = vmatprep.subr.bf16.mxu0 %v3069_v19 }
 0xa8a   : > { %2676 = vmatpush3.bf16.msra.mxu0 %v2839_v12 }
 0xb50   : > { %v1764_v13 = vpop.f32.mrb[28].mxu0 }
 0xb51   : > { %v2661_v14 = vpop.f32.mrb[29].mxu0 }
 0xb52   : > { %v1767_v15 = vpop.f32.mrb[30].mxu0 }
 0xb53   : > { %v2662_v18 = vpop.f32.mrb[31].mxu0 }
 0xb54   : > { %v1813_v20 = vpop.f32.mrb[40].mxu1 }
 0xb55   : > { %v1819_v21 = vpack.c.bf16 %v1813_v20, %v1764_v13  ;;  %v2667_v22 = vpop.f32.mrb[41].mxu1 }
 0xb56   : > { %v1816_v23 = vpop.f32.mrb[42].mxu1 }
 0xb57   : > { %v2668_v24 = vpop.f32.mrb[43].mxu1  ;;  %1821 = vrot.lane.b32.xlu0 %v1819_v21, %s3076_s6 }
 0xbc9   : > { %v1822_v5 = vpop.permute.xlu0 %1821 }
 0xbca   : > { %1825 = vst.msk [vmem:[#allocation8] sm:$0xff] %vm1824_vm7, %v1822_v5 }
 0xbd1   : > { %v1826_v25 = vld [vmem:[#allocation8] sm:$0xff] }
 0xbd2   : > { %2678 = vmatmul.mubr.msk.bf16.vlgmr.msra.gmra.mrb[32].mxu0 %vm607_vm0, %v1826_v25 }
 0xca5   : > { %v1896_v26 = vpop.f32.mrb[32].mxu0 }
 0xca6   : > { %v1903_v19 = vadd.f32 %v1896_v26, %v3302_v16  ;;  %v2679_v27 = vpop.f32.mrb[33].mxu0 }
 0xca7   : > { %v1899_v28 = vpop.f32.mrb[34].mxu0 }
 0xca8   : > { %1905 = vst.msk [vmem:[#allocation2] sm:$0xff] %vm607_vm0, %v1903_v19  ;;  %v1904_v29 = vadd.f32 %v1899_v28, %v3304_v17  ;;  %v2680_v30 = vpop.f32.mrb[35].mxu0  ;;  %v1908_v31 = vmul.f32 %v1903_v19, %v1903_v19 }
 0xcaa   : > { %1906 = vst.msk [vmem:[#allocation2 + $0x8] sm:$0xff] %vm607_vm0, %v1904_v29  ;;  %v1910_v32 = vsel %vm607_vm0, %v1908_v31, 0.0  ;;  %v1909_v33 = vmul.f32 %v1904_v29, %v1904_v29 }
 0xcab   : > { %1911 = vadd.xlane.f32.xlu1 %v1910_v32 }
 0xcac   : > { %v1913_v34 = vsel %vm607_vm0, %v1909_v33, 0.0 }
 0xcad   : > { %1914 = vadd.xlane.f32.xlu0 %v1913_v34 }
 0xd38   : > { %v1912_v35 = vpop.xlane.xlu1 %1911 }
 0xd39   : > { %v1916_v36 = vmul.f32 0.015625, %v1912_v35 }
 0xd3a   : > { %v1915_v16 = vpop.xlane.xlu0 %1914 }
 0xd3b   : > { %v1918_v37 = vadd.f32 1e-06, %v1916_v36  ;;  %v1917_v38 = vmul.f32 0.015625, %v1915_v16 }
 0xd3d   : > { %2876 = vrsqrt.f32 %v1918_v37  ;;  %v1919_v39 = vadd.f32 1e-06, %v1917_v38 }
 0xd3f   : > { %2878 = vrsqrt.f32 %v1919_v39 }
 0xd47   : > { %v2877_v17 = vpop.eup %2876 }
 0xd48   : > { %v1922_v40 = vmul.f32 %v2877_v17, %v1903_v19 }
 0xd49   : > { %v2879_v43 = vpop.eup %2878 }
 0xd4a   : > { %v1923_v45 = vmul.f32 %v2879_v43, %v1904_v29  ;;  %v1930_v48 = vmul.f32 %v2442_v44, %v1922_v40 }
 0xd4c   : > { %v1931_v49 = vmul.f32 %v2442_v44, %v1923_v45 }
 0xd4e   : > { %v1932_v50 = vpack.c.bf16 %v1931_v49, %v1930_v48 }
 0xd50   : > { %1933 = vst.msk [vmem:[#allocation3] sm:$0xff] %vm607_vm0, %v1932_v50 }
 0xd51 PF: > { %v2880_v51 = vld [vmem:[%s3297_s19] sm:$0xff]   ;;  %v3077_v52 = vmov 0.0   ;;  %v2881_v53 = vld [vmem:[%s3297_s19 + $0x8] sm:$0xff]   ;;  %vm3078_vm8 = vmmov 0   ;;  %v2882_v54 = vld [vmem:[%s3297_s19 + $0x10] sm:$0xff]   ;;  %vm1969_vm9 = vcmask 523264  }
 0xd52   : > { %2681 = vmatprep.subr.bf16.mxu1 %v3077_v52  ;;  %2705 = vmatprep.subr.bf16.mxu0 %v3077_v52  ;;  %v2883_v55 = vld [vmem:[%s3297_s19 + $0x18] sm:$0xff]   ;;  %v2884_v57 = vld [vmem:[%s3299_s28] sm:$0xff]   ;;  %v2885_v58 = vld [vmem:[%s3299_s28 + $0x8] sm:$0xff]   ;;  %p2461_p0 = scmp.ne.s32.totalorder %s3052_s15, 1 }
 0xd53   : > { %2682 = vmatpush3.bf16.msra.mxu1 %v2880_v51  ;;  %2689 = vmatprep.mubr.msk.bf16.mxu1 %vm3078_vm8, %v3077_v52  ;;  %v2886_v59 = vld [vmem:[%s3299_s28 + $0x10] sm:$0xff]   ;;  %v2887_v42 = vld [vmem:[%s3299_s28 + $0x18] sm:$0xff]   ;;  %v2888_v41 = vld [vmem:[%s3295_s3] sm:$0xff]  }
 0xd54   : > { %2683 = vmatprep.subr.bf16.mxu1 %v3077_v52  ;;  %2721 = vmatprep.mubr.msk.bf16.mxu0 %vm3078_vm8, %v3077_v52  ;;  %v2889_v46 = vld [vmem:[%s3295_s3 + $0x8] sm:$0xff]   ;;  %v2890_v47 = vld [vmem:[%s3295_s3 + $0x10] sm:$0xff]   ;;  %v2891_v61 = vld [vmem:[%s3295_s3 + $0x18] sm:$0xff]  }
 0xd55   : > { %2706 = vmatpush3.bf16.msra.mxu0 %v2888_v41  ;;  %v2892_v62 = vld [vmem:[%s3295_s3 + $0x20] sm:$0xff]   ;;  %v2893_v63 = vld [vmem:[%s3295_s3 + $0x28] sm:$0xff]   ;;  %v2894_v0 = vld [vmem:[%s3295_s3 + $0x30] sm:$0xff]  }
 0xd56   : > { %2707 = vmatprep.subr.bf16.mxu0 %v3077_v52  ;;  %v2895_v1 = vld [vmem:[%s3295_s3 + $0x38] sm:$0xff]   ;;  %v2106_v34 = vld [vmem:[#allocation4 + $0x8] sm:$0xff]  ;;  %v2224_v40 = vld [vmem:[#allocation2 + $0x8] sm:$0xff] (!%p2461_p0) }
 0xd57   : > { %2684 = vmatpush3.bf16.msra.mxu1 %v2881_v53  ;;  %v1936_v56 = vld [vmem:[#allocation3] sm:$0xff]  ;;  %v2105_v32 = vld [vmem:[#allocation4] sm:$0xff]  ;;  %v2223_v39 = vld [vmem:[#allocation2] sm:$0xff] (!%p2461_p0) }
 0xd58   : > { %2685 = vmatprep.subr.bf16.mxu1 %v3077_v52 }
 0xd59   : > { %2708 = vmatpush3.bf16.msra.mxu0 %v2889_v46 }
 0xd5a   : > { %2709 = vmatprep.subr.bf16.mxu0 %v3077_v52 }
 0xd5b   : > { %2686 = vmatpush3.bf16.msra.mxu1 %v2882_v54 }
 0xd5c   : > { %2687 = vmatprep.subr.bf16.mxu1 %v3077_v52 }
 0xd5d   : > { %2710 = vmatpush3.bf16.msra.mxu0 %v2890_v47 }
 0xd5e   : > { %2711 = vmatprep.subr.bf16.mxu0 %v3077_v52 }
 0xd5f   : > { %2688 = vmatpush3.bf16.msra.mxu1 %v2883_v55 }
 0xd60   : > { %2693 = vmatprep.subr.bf16.mxu1 %v3077_v52 }
 0xd61   : > { %2712 = vmatpush3.bf16.msra.mxu0 %v2891_v61 }
 0xd62   : > { %2690 = vmatmul.mubr.msk.bf16.vlgmr.msra.gmra.mrb[0].mxu1 %vm1969_vm9, %v1936_v56  ;;  %2713 = vmatprep.subr.bf16.mxu0 %v3077_v52 }
 0xd63   : > { %2694 = vmatpush3.bf16.msra.mxu1 %v2884_v57  ;;  %2701 = vmatprep.mubr.msk.bf16.mxu1 %vm3078_vm8, %v3077_v52 }
 0xd64   : > { %2695 = vmatprep.subr.bf16.mxu1 %v3077_v52 }
 0xd65   : > { %2714 = vmatpush3.bf16.msra.mxu0 %v2892_v62 }
 0xd66   : > { %2715 = vmatprep.subr.bf16.mxu0 %v3077_v52 }
 0xd67   : > { %2696 = vmatpush3.bf16.msra.mxu1 %v2885_v58 }
 0xd68   : > { %2697 = vmatprep.subr.bf16.mxu1 %v3077_v52 }
 0xd69   : > { %2716 = vmatpush3.bf16.msra.mxu0 %v2893_v63 }
 0xd6a   : > { %2717 = vmatprep.subr.bf16.mxu0 %v3077_v52 }
 0xd6b   : > { %2698 = vmatpush3.bf16.msra.mxu1 %v2886_v59 }
 0xd6c   : > { %2699 = vmatprep.subr.bf16.mxu1 %v3077_v52 }
 0xd6d   : > { %2718 = vmatpush3.bf16.msra.mxu0 %v2894_v0 }
 0xd6e   : > { %2719 = vmatprep.subr.bf16.mxu0 %v3077_v52 }
 0xd6f   : > { %2700 = vmatpush3.bf16.msra.mxu1 %v2887_v42 }
 0xd71   : > { %2720 = vmatpush3.bf16.msra.mxu0 %v2895_v1 }
 0xd72   : > { %2702 = vmatmul.mubr.msk.bf16.vlgmr.msra.gmra.mrb[4].mxu1 %vm1969_vm9, %v1936_v56 }
 0xe35   : > { %v2007_v2 = vpop.f32.mrb[0].mxu1 }
 0xe36   : > { %v2014_v3 = vmul.f32 %v2007_v2, %v2007_v2  ;;  %v2691_v6 = vpop.f32.mrb[1].mxu1 }
 0xe37   : > { %v2010_v7 = vpop.f32.mrb[2].mxu1 }
 0xe38   : > { %v2016_v60 = vmul.f32 %v2014_v3, %v2007_v2  ;;  %v2015_v4 = vmul.f32 %v2010_v7, %v2010_v7  ;;  %v2692_v9 = vpop.f32.mrb[3].mxu1 }
 0xe3a   : > { %v2018_v10 = vmul.f32 0.044715, %v2016_v60  ;;  %v2017_v8 = vmul.f32 %v2015_v4, %v2010_v7 }
 0xe3c   : > { %v2020_v11 = vadd.f32 %v2018_v10, %v2007_v2  ;;  %v2019_v12 = vmul.f32 0.044715, %v2017_v8 }
 0xe3e   : > { %v2022_v13 = vmul.f32 0.7978846, %v2020_v11  ;;  %v2021_v14 = vadd.f32 %v2019_v12, %v2010_v7 }
 0xe40   : > { %2896 = vtanh.f32 %v2022_v13  ;;  %v2023_v15 = vmul.f32 0.7978846, %v2021_v14 }
 0xe42   : > { %2898 = vtanh.f32 %v2023_v15 }
 0xe45   : > { %v2098_v18 = vpop.f32.mrb[4].mxu1 }
 0xe46   : > { %v2703_v20 = vpop.f32.mrb[5].mxu1 }
 0xe47   : > { %v2101_v21 = vpop.f32.mrb[6].mxu1 }
 0xe48   : > { %v2704_v22 = vpop.f32.mrb[7].mxu1 }
 0xe4a   : > { %v2897_v23 = vpop.eup %2896 }
 0xe4b   : > { %v2026_v24 = vadd.f32 1.0, %v2897_v23 }
 0xe4c   : > { %v2899_v5 = vpop.eup %2898 }
 0xe4d   : > { %v2028_v25 = vmul.f32 0.5, %v2026_v24  ;;  %v2027_v26 = vadd.f32 1.0, %v2899_v5 }
 0xe4f   : > { %v2030_v19 = vmul.f32 %v2028_v25, %v2007_v2  ;;  %v2029_v27 = vmul.f32 0.5, %v2027_v26 }
 0xe51   : > { %v2107_v28 = vmul.f32 %v2098_v18, %v2030_v19  ;;  %v2031_v29 = vmul.f32 %v2029_v27, %v2010_v7 }
 0xe53   : > { %v2108_v30 = vmul.f32 %v2101_v21, %v2031_v29 }
 0xe55   : > { %v2109_v31 = vpack.c.bf16 %v2108_v30, %v2107_v28 }
 0xe57   : > { %2722 = vmatmul.mubr.bf16.vlgmr.msra.gmra.mrb[0].mxu0 %v2109_v31 }
 0xf29   : > { %2222 = sbr.rel (%p2461_p0) target bundleno = 3898 (0xf3a), region = 162 }
 0xf2a   : > { %v2208_v33 = vpop.f32.mrb[0].mxu0 }
 0xf2b   : > { %v2215_v35 = vadd.f32 %v2208_v33, %v2105_v32  ;;  %v2723_v36 = vpop.f32.mrb[1].mxu0 }
 0xf2c   : > { %v2211_v16 = vpop.f32.mrb[2].mxu0 }
 0xf2d   : > { %2217 = vst.msk [vmem:[#allocation4] sm:$0xff] %vm1969_vm9, %v2215_v35  ;;  %v2216_v37 = vadd.f32 %v2211_v16, %v2106_v34  ;;  %v2724_v38 = vpop.f32.mrb[3].mxu0 }
 0xf2f   : > { %2218 = vst.msk [vmem:[#allocation4 + $0x8] sm:$0xff] %vm1969_vm9, %v2216_v37 }
 0xf34   : > { %v2225_v17 = vld [vmem:[#allocation4] sm:$0xff] }
 0xf35   : > { %v2227_v43 = vadd.f32 %v2225_v17, %v2223_v39 }
 0xf36   : > { %v2226_v44 = vld [vmem:[#allocation4 + $0x8] sm:$0xff] }
 0xf37   : > { %v2228_v45 = vadd.f32 %v2226_v44, %v2224_v40  ;;  %2229 = vst.msk [vmem:[#allocation17] sm:$0xff] %vm1969_vm9, %v2227_v43 }
 0xf39   : > { %2230 = vst.msk [vmem:[#allocation17 + $0x8] sm:$0xff] %vm1969_vm9, %v2228_v45 }
 0xf3a PF: > { %s3655_s3 = sadd.s32 4294967295, %s3060_s17   ;;  %s3079_s15 = smov [#allocation17]  }
 0xf3b   : > { %p3574_p1 = scmp.eq.s32.totalorder %s3655_s3, 1  ;;  %s2240_s28 = sshll.u32 %s3079_s15, 4  ;;  %s2241_s28 = int_to_ptr.vmem [resolvable:$true] %s2240_s28 }
 0xf3c   : > { %s2984_s12 = scalar_lea.vmem %s2241_s28, 256  ;;  %p2991_p6 = scmp.lt.s32.totalorder %s2241_s28, %s2241_s28 }
 0xf3d   : > { %p2985_p2 = scmp.ne.s32.totalorder %s2241_s28, %s2984_s12  ;;  %p2992_p9 = scmp.lt.s32.totalorder %s2984_s12, %s2984_s12 }
 0xf3f   : > { %p2986_p4 = pnand %p2985_p2, %p3574_p1  ;;  %p2993_p3 = por %p2992_p9, %p2991_p6 }
 0xf41   : > { %p2987_p5 = pneg %p2986_p4 }
 0xf43   : > { %p2994_p12 = pnand %p2993_p3, %p2987_p5 }
 0xf45   : > { %2997 = shalt.err (!%p2994_p12)
}
 0xf46   : > { %s3657_s1 = sld [smem:[#allocation26_spill]] }
 0xf4c   : > { %s2998_s13 = scalar_lea.hbm %s3657_s1, 256 }
 0xf4d   : > { %p2999_p10 = scmp.ne.s32.totalorder %s3657_s1, %s2998_s13  ;;  %p3004_p11 = scmp.lt.u32.totalorder %s2998_s13, %s3657_s1 }
 0xf4f   : > { %p3000_p7 = pnand %p2999_p10, %p3574_p1 }
 0xf51   : > { %p3001_p8 = pneg %p3000_p7 }
 0xf53   : > { %p3006_p13 = pnand %p3004_p11, %p3001_p8 }
 0xf55   : > { %3009 = shalt.err (!%p3006_p13)
}
 0xf56   : > { %s3080_s29 = smov 128   ;;  %s3081_s27 = smov 8  }
 0xf57   : > { %2738 = dma.vmem_to_hbm [thread:$0]  (%p3574_p1), %s2241_s28, 256, %s3657_s1, [#allocation11], %s3080_s29, %s3080_s29, %s3081_s27  }
 0xf58   : > { %3039 = dma.done.wait (%p3574_p1), [#allocation11], 256  }
 0xf59   : > { %3041 = vsyncadd (%p3574_p1), [#allocation11], 4294967040 }
 0xf5a PF: > { %s23_s17 = sadd.s32 1, %s3060_s17   ;;  %s3658_s10 = sld [smem:[#allocation22_spill]] }
 0xf5b   : > { %p20_p0 = scmp.ge.s32.totalorder %s23_s17, 4   ;;  %s3659_s21 = sld [smem:[#allocation21_spill]] }
 0xf5c   : > { %s3660_s13 = smov %s3048_s14  ;;  %s3662_s15 = smov %s3056_s16 }
 0xf5d   :  { %22 = sbr.rel (!%p20_p0) target bundleno = 10 (0xa), region = 208 }
 0xf60   : > { %s3661_s14 = smov %s3658_s10 }
 0xf61   : > { %s3663_s16 = smov %s3659_s21 }
 0xf64   :  { %2256 = vsyncpa [#allocation10], 1 }
 0xf65   :  { %2258 = vsyncpa [#allocation10 + $0x1], 1 }
 0xf66   :  { %2259 = vsyncpa [#allocation13], 1 }
 0xf67   :  { %2260 = vsyncpa [#allocation11], 1 }
 0xf68   :  { %2262 = vsyncpa [#allocation11 + $0x1], 1 }

</bundles_post_ra>
